<compile_context>
chip_gen: v5e
topology: v5e:2x2
jax: 0.10.0
libtpu: 0.0.40
codegen_flags: <defaults>
</compile_context>

<pallas_src>
import functools

import jax
import jax.numpy as jnp
from jax.experimental import pallas as pl
from jax.experimental.pallas import tpu as pltpu


def _round_up(n, m):
    return ((n + m - 1) // m) * m


def _pick_tile(n, target, multiple):
    """Largest multiple of `multiple` that divides n and is <= target."""
    t = min(target, n)
    t -= t % multiple
    for cand in range(t, multiple - 1, -multiple):
        if n % cand == 0:
            return cand
    # TODO(synk): for awkward N (e.g. H*W = 196) this falls back to the full
    # extent, which is legal but makes a (Tq, N) score tile; pad N upstream.
    return n


def _bf16_exp_default():
    """Enable the bf16 EUP exp path only on chips that have one (v6e / v7x)."""
    try:
        kind = jax.devices()[0].device_kind.lower()
    except Exception:  # pragma: no cover - defensive
        return False
    return ("v6" in kind) or ("v7" in kind)


def _self_attention_kernel(xq_ref, kt_ref, v_ref, wq_ref, bq_ref, g_ref,
                           o_ref, q_sc, m_sc, acc_sc, *, c_sum, c_out,
                           bf16_exp):
    # xq_ref: (1, Tq, Cp) f32   -- x query tile (Q projection input + residual)
    # kt_ref: (1, Cqp, Tkv) bf16 -- precomputed K^T tile (bias included)
    # v_ref : (1, Tkv, Cvp) bf16 -- precomputed V tile (bias + 1.0 sum lane)
    # wq_ref: (Cp, Cqp) bf16, bq_ref: (1, Cqp) f32, g_ref: (1,) f32 in SMEM
    j = pl.program_id(2)
    nj = pl.num_programs(2)

    # ---- init: first kv step for this (batch, query-tile) -----------------
    @pl.when(j == 0)
    def _init():
        xq = xq_ref[0]                                            # (Tq, Cp) f32
        q = jnp.dot(xq.astype(jnp.bfloat16), wq_ref[...],
                    preferred_element_type=jnp.float32) + bq_ref[...]
        q_sc[...] = q.astype(jnp.bfloat16)                        # cached Q tile
        m_sc[...] = jnp.full(m_sc.shape, -jnp.inf, jnp.float32)
        acc_sc[...] = jnp.zeros(acc_sc.shape, jnp.float32)

    # ---- scores: K already transposed -> plain MXU matmul, no vxpose ------
    s = jnp.dot(q_sc[...], kt_ref[0],
                preferred_element_type=jnp.float32)               # (Tq, Tkv)

    # ---- online softmax (element-wise math in f32, probs bf16 for MXU) ----
    m_prev = m_sc[...]
    m_new = jnp.maximum(m_prev, jnp.max(s, axis=-1, keepdims=True))
    alpha = jnp.exp(m_prev - m_new)
    if bf16_exp:
        p = jnp.exp((s - m_new).astype(jnp.bfloat16))             # bf16 EUP
    else:
        p = jnp.exp(s - m_new).astype(jnp.bfloat16)               # f32 EUP (v5e)
    # The PV matmul also accumulates sum(p) in lane `c_sum` (V's 1.0 column),
    # so no per-step cross-lane row-sum is needed.
    acc_sc[...] = alpha * acc_sc[...] + jnp.dot(
        p, v_ref[0], preferred_element_type=jnp.float32)
    m_sc[...] = m_new

    # ---- finalize: last kv step --------------------------------------------
    @pl.when(j == nj - 1)
    def _fin():
        acc = acc_sc[...]
        inv_l = pl.reciprocal(acc[:, c_sum:c_sum + 1], approx=True)  # EUP vrcp
        out = acc[:, :c_out] * inv_l       # V bias rides the normalization
        o_ref[0] = g_ref[0] * out + xq_ref[0]


def self_attention_pallas(x_nchw, wq, bq, wk, bk, wv, bv, gamma, *,
                          tq_target=256, tkv_target=512, bf16_exp=None):
    """x_nchw: (B, C, H, W) f32.  wq/wk: (C//8, C), wv: (C, C), biases 1-D."""
    B, C, H, W = x_nchw.shape
    N = H * W
    Cq = wq.shape[0]
    f32 = jnp.float32
    bf16 = jnp.bfloat16

    if bf16_exp is None:
        bf16_exp = _bf16_exp_default()

    Cp = _round_up(C, 128)             # lane-dense value / residual channels
    Cqp = _round_up(Cq, 128)           # lane-dense q/k channels (no over-pad)
    Cvp = _round_up(C + 1, 128)        # V width incl. the folded row-sum lane
    Tq = _pick_tile(N, tq_target, 8)       # query-pixel tile
    Tkv = _pick_tile(N, tkv_target, 128)   # kv-pixel tile (lane dim of K^T)

    # ---- layout glue (NCHW interface): NCHW -> (B, N, C) channels-last -----
    # TODO(synk): in a channels-last pipeline these transposes (and the final
    # crop/transpose) disappear; each is an extra HBM pass.
    x_bnc = jnp.transpose(x_nchw.reshape(B, C, N), (0, 2, 1)).astype(f32)

    wq32, wk32, wv32 = (jnp.asarray(w, f32) for w in (wq, wk, wv))
    bq32, bk32, bv32 = (jnp.asarray(b, f32) for b in (bq, bk, bv))

    # ---- hoisted K / V projections (the 1x1 convs), computed once ----------
    k_bnc = jnp.einsum('bnc,oc->bno', x_bnc, wk32) + bk32          # (B, N, Cq)
    kt_p = jnp.pad(jnp.transpose(k_bnc, (0, 2, 1)),                # (B, Cq, N)
                   ((0, 0), (0, Cqp - Cq), (0, 0))).astype(bf16)   # (B, Cqp, N)

    v_bnc = jnp.einsum('bnc,oc->bno', x_bnc, wv32) + bv32          # (B, N, C)
    v_p = jnp.pad(v_bnc, ((0, 0), (0, 0), (0, Cvp - C)))
    v_p = v_p.at[:, :, C].set(1.0).astype(bf16)    # row-sum lane rides the MXU

    # q-side input: f32 (exact residual), lane-padded
    xq_p = x_bnc if Cp == C else jnp.pad(x_bnc, ((0, 0), (0, 0), (0, Cp - C)))

    # resident Q-projection weight (bf16 MXU operand) + f32 bias + gamma scalar
    wq_p = jnp.zeros((Cp, Cqp), f32).at[:C, :Cq].set(wq32.T).astype(bf16)
    bq_p = jnp.zeros((1, Cqp), f32).at[0, :Cq].set(bq32)
    g1 = jnp.asarray(gamma, f32).reshape(1)

    grid = (B, N // Tq, N // Tkv)

    # VMEM budget: double-buffered blocks + resident weights + scratch + live
    # intermediates (no 2x hedge); capped below the physical per-core VMEM.
    est = (2 * Tq * Cp * 4                      # xq blocks (f32)
           + 2 * Cqp * Tkv * 2                  # K^T blocks (bf16)
           + 2 * Tkv * Cvp * 2                  # V blocks (bf16)
           + 2 * Tq * Cp * 4                    # out blocks (f32)
           + 2 * Cp * Cqp * 2 + 2 * 8 * 128 * 4       # Wq + bq
           + Tq * Cqp * 2 + 8 * 128 * 4 + Tq * Cvp * 4   # scratch
           + 3 * Tq * Tkv * 4 + 2 * Tq * Cvp * 4)        # live intermediates
    try:
        phys = int(pltpu.get_tpu_info().vmem_capacity_bytes)
    except Exception:  # pragma: no cover - defensive
        phys = 64 * 1024 * 1024                 # v7x per-core VMEM
    cap = max(phys - 8 * 1024 * 1024, 16 * 1024 * 1024)
    vmem_limit = int(min(max(int(est * 1.25), 32 * 1024 * 1024), cap))

    kernel = functools.partial(_self_attention_kernel, c_sum=C, c_out=Cp,
                               bf16_exp=bool(bf16_exp))

    out_padded = pl.pallas_call(
        kernel,
        out_shape=jax.ShapeDtypeStruct((B, N, Cp), f32),
        grid=grid,
        in_specs=[
            pl.BlockSpec((1, Tq, Cp), lambda b, i, j: (b, i, 0)),    # x q-tile
            # TODO(synk): add pipeline_mode=pl.Buffered(3) on the two kv
            # streams below if a profile shows exposed DMA latency.
            pl.BlockSpec((1, Cqp, Tkv), lambda b, i, j: (b, 0, j)),  # K^T tile
            pl.BlockSpec((1, Tkv, Cvp), lambda b, i, j: (b, j, 0)),  # V tile
            pl.BlockSpec((Cp, Cqp), lambda b, i, j: (0, 0)),         # Wq^T
            pl.BlockSpec((1, Cqp), lambda b, i, j: (0, 0)),          # bq
            pl.BlockSpec(memory_space=pltpu.MemorySpace.SMEM),       # gamma
        ],
        out_specs=pl.BlockSpec((1, Tq, Cp), lambda b, i, j: (b, i, 0)),
        scratch_shapes=[
            pltpu.VMEM((Tq, Cqp), bf16),   # cached Q tile
            pltpu.VMEM((Tq, 1), f32),      # running max
            pltpu.VMEM((Tq, Cvp), f32),    # output accumulator (+ row-sum lane)
        ],
        compiler_params=pltpu.CompilerParams(
            dimension_semantics=("parallel", "parallel", "arbitrary"),
            vmem_limit_bytes=vmem_limit),
    )(xq_p, kt_p, v_p, wq_p, bq_p, g1)

    # ---- glue back: (B, N, Cp) -> (B, C, H, W) ----
    return jnp.transpose(out_padded[:, :, :C], (0, 2, 1)).reshape(B, C, H, W)


def self_attention_reference(x_nchw, wq, bq, wk, bk, wv, bv, gamma):
    """Pure-JAX f32 reference mirroring the PyTorch forward exactly."""
    B, C, H, W = x_nchw.shape
    N = H * W
    xf = x_nchw.reshape(B, C, N)                                     # (B, C, N)
    q = jnp.einsum('oc,bcn->bon', wq, xf) + bq[None, :, None]        # (B, Cq, N)
    k = jnp.einsum('oc,bcn->bon', wk, xf) + bk[None, :, None]
    v = jnp.einsum('oc,bcn->bon', wv, xf) + bv[None, :, None]        # (B, C, N)
    energy = jnp.einsum('bcn,bcm->bnm', q, k)                        # (B, N, N)
    attn = jax.nn.softmax(energy, axis=-1)
    out = jnp.einsum('bcn,bmn->bcm', v, attn)                        # (B, C, N)
    return (gamma * out + xf).reshape(B, C, H, W)


if __name__ == "__main__":
    B, C, H, W = 2, 32, 16, 16        # N = 256 pixels, Cq = 4
    Cq = C // 8

    key = jax.random.PRNGKey(0)
    kx, kwq, kbq, kwk, kbk, kwv, kbv = jax.random.split(key, 7)

    x = jax.random.normal(kx, (B, C, H, W), dtype=jnp.float32)
    # 1x1 conv weights == dense (out_ch, in_ch) matrices (kernel dims squeezed)
    wq = jax.random.normal(kwq, (Cq, C), dtype=jnp.float32) * 0.1
    bq = jax.random.normal(kbq, (Cq,), dtype=jnp.float32) * 0.1
    wk = jax.random.normal(kwk, (Cq, C), dtype=jnp.float32) * 0.1
    bk = jax.random.normal(kbk, (Cq,), dtype=jnp.float32) * 0.1
    wv = jax.random.normal(kwv, (C, C), dtype=jnp.float32) * 0.1
    bv = jax.random.normal(kbv, (C,), dtype=jnp.float32) * 0.1

    # First config: single kv step / single q tile.  Second: multi-step kv loop
    # (Tkv=128 < N) + multiple query tiles, validating the online-softmax
    # accumulator and the folded row-sum lane.  gamma = 0 matches the module's
    # init (output == x); gamma = 0.5 exercises the attention path.  Tolerance
    # accounts for bf16 MXU operands / bf16 probs + approx reciprocal.
    for tq_t, tkv_t in ((256, 512), (64, 128)):
        for gamma_val in (0.0, 0.5):
            gamma = jnp.array(gamma_val, dtype=jnp.float32)
            y = self_attention_pallas(x, wq, bq, wk, bk, wv, bv, gamma,
                                      tq_target=tq_t, tkv_target=tkv_t)
            y = jax.block_until_ready(y)
            y_ref = self_attention_reference(x, wq, bq, wk, bk, wv, bv, gamma)
            assert y.shape == (B, C, H, W)
            err = float(jnp.max(jnp.abs(y - y_ref)))
            assert jnp.allclose(y, y_ref, atol=3e-2, rtol=3e-2), (
                f"mismatch tiles=({tq_t},{tkv_t}) gamma={gamma_val}: max err {err}")

    print("KERNEL_OK")
</pallas_src>

<mosaic_0001>
module attributes {stable_mosaic.version = 11 : i64} {
  func.func @_self_attention_kernel(%arg0: i32, %arg1: i32, %arg2: i32, %arg3: memref<1x256x128xf32, #tpu.memory_space<vmem>>, %arg4: memref<1x128x256xbf16, #tpu.memory_space<vmem>>, %arg5: memref<1x256x128xbf16, #tpu.memory_space<vmem>>, %arg6: memref<128x128xbf16, #tpu.memory_space<vmem>>, %arg7: memref<1x128xf32, #tpu.memory_space<vmem>>, %arg8: memref<1xf32, #tpu.memory_space<smem>>, %arg9: memref<1x256x128xf32, #tpu.memory_space<vmem>>, %arg10: memref<256x128xbf16, #tpu.memory_space<vmem>>, %arg11: memref<256x1xf32, #tpu.memory_space<vmem>>, %arg12: memref<256x128xf32, #tpu.memory_space<vmem>>) attributes {dimension_semantics = [#tpu.dimension_semantics<parallel>, #tpu.dimension_semantics<parallel>, #tpu.dimension_semantics<arbitrary>], iteration_bounds = array<i64: 2, 1, 1>, scalar_prefetch = 0 : i64, scratch_operands = 3 : i64, tpu.core_type = #tpu.core_type<tc>, window_params = [{transform_indices = @transform_0, window_bounds = array<i64: 1, 256, 128>}, {transform_indices = @transform_1, window_bounds = array<i64: 1, 128, 256>}, {transform_indices = @transform_2, window_bounds = array<i64: 1, 256, 128>}, {pipeline_mode = #tpu.pipeline_mode<synchronous>, transform_indices = @transform_3, window_bounds = array<i64: 128, 128>}, {pipeline_mode = #tpu.pipeline_mode<synchronous>, transform_indices = @transform_4, window_bounds = array<i64: 1, 128>}, {transform_indices = @transform_5, window_bounds = array<i64: 1>}, {transform_indices = @transform_6, window_bounds = array<i64: 1, 256, 128>}]} {
    %c0_i32 = arith.constant 0 : i32
    %0 = arith.cmpi eq, %arg2, %c0_i32 : i32
    %1 = arith.extui %0 : i1 to i32
    %c0_i32_0 = arith.constant 0 : i32
    %2 = arith.cmpi ne, %1, %c0_i32_0 : i32
    scf.if %2 {
      %c0_20 = arith.constant 0 : index
      %c0_21 = arith.constant 0 : index
      %c0_22 = arith.constant 0 : index
      %29 = vector.load %arg3[%c0_20, %c0_21, %c0_22] : memref<1x256x128xf32, #tpu.memory_space<vmem>>, vector<1x256x128xf32>
      %30 = vector.shape_cast %29 : vector<1x256x128xf32> to vector<256x128xf32>
      %31 = arith.truncf %30 : vector<256x128xf32> to vector<256x128xbf16>
      %c0_23 = arith.constant 0 : index
      %c0_24 = arith.constant 0 : index
      %32 = vector.load %arg6[%c0_23, %c0_24] : memref<128x128xbf16, #tpu.memory_space<vmem>>, vector<128x128xbf16>
      %cst_25 = arith.constant dense<0.000000e+00> : vector<256x128xf32>
      %33 = tpu.matmul %31, %32, %cst_25 {dimension_numbers = #tpu.dot_dimension_numbers<[1], [0], [0], [1], [0, 0, 1, 1], [], []>} : vector<256x128xbf16>, vector<128x128xbf16>, vector<256x128xf32> -> vector<256x128xf32>
      %c0_26 = arith.constant 0 : index
      %c0_27 = arith.constant 0 : index
      %34 = vector.load %arg7[%c0_26, %c0_27] : memref<1x128xf32, #tpu.memory_space<vmem>>, vector<1x128xf32>
      %35 = vector.broadcast %34 : vector<1x128xf32> to vector<256x128xf32>
      %36 = arith.addf %33, %35 : vector<256x128xf32>
      %37 = arith.truncf %36 : vector<256x128xf32> to vector<256x128xbf16>
      %c0_28 = arith.constant 0 : index
      %c0_29 = arith.constant 0 : index
      %38 = vector.load %arg10[%c0_28, %c0_29] : memref<256x128xbf16, #tpu.memory_space<vmem>>, vector<256x128xbf16>
      tpu.vector_store %arg10[%c0_28, %c0_29], %37 {strides = array<i32>} : memref<256x128xbf16, #tpu.memory_space<vmem>>, vector<256x128xbf16>,
      %cst_30 = arith.constant 0xFF800000 : f32
      %39 = vector.broadcast %cst_30 : f32 to vector<256x1xf32>
      %c0_31 = arith.constant 0 : index
      %c0_32 = arith.constant 0 : index
      %40 = vector.load %arg11[%c0_31, %c0_32] : memref<256x1xf32, #tpu.memory_space<vmem>>, vector<256x1xf32>
      tpu.vector_store %arg11[%c0_31, %c0_32], %39 {strides = array<i32>} : memref<256x1xf32, #tpu.memory_space<vmem>>, vector<256x1xf32>,
      %cst_33 = arith.constant 0.000000e+00 : f32
      %41 = vector.broadcast %cst_33 : f32 to vector<256x128xf32>
      %c0_34 = arith.constant 0 : index
      %c0_35 = arith.constant 0 : index
      %42 = vector.load %arg12[%c0_34, %c0_35] : memref<256x128xf32, #tpu.memory_space<vmem>>, vector<256x128xf32>
      tpu.vector_store %arg12[%c0_34, %c0_35], %41 {strides = array<i32>} : memref<256x128xf32, #tpu.memory_space<vmem>>, vector<256x128xf32>,
    } else {
    }
    %c0 = arith.constant 0 : index
    %c0_1 = arith.constant 0 : index
    %3 = vector.load %arg10[%c0, %c0_1] : memref<256x128xbf16, #tpu.memory_space<vmem>>, vector<256x128xbf16>
    %c0_2 = arith.constant 0 : index
    %c0_3 = arith.constant 0 : index
    %c0_4 = arith.constant 0 : index
    %4 = vector.load %arg4[%c0_2, %c0_3, %c0_4] : memref<1x128x256xbf16, #tpu.memory_space<vmem>>, vector<1x128x256xbf16>
    %5 = vector.shape_cast %4 : vector<1x128x256xbf16> to vector<128x256xbf16>
    %cst = arith.constant dense<0.000000e+00> : vector<256x256xf32>
    %6 = tpu.matmul %3, %5, %cst {dimension_numbers = #tpu.dot_dimension_numbers<[1], [0], [0], [1], [0, 0, 1, 1], [], []>} : vector<256x128xbf16>, vector<128x256xbf16>, vector<256x256xf32> -> vector<256x256xf32>
    %c0_5 = arith.constant 0 : index
    %c0_6 = arith.constant 0 : index
    %7 = vector.load %arg11[%c0_5, %c0_6] : memref<256x1xf32, #tpu.memory_space<vmem>>, vector<256x1xf32>
    %cst_7 = arith.constant dense<0xFF800000> : vector<256xf32>
    %8 = vector.multi_reduction <maximumf>, %6, %cst_7 [1] : vector<256x256xf32> to vector<256xf32>
    %9 = vector.shape_cast %8 : vector<256xf32> to vector<256x1xf32>
    %10 = arith.maximumf %7, %9 : vector<256x1xf32>
    %11 = arith.subf %7, %10 : vector<256x1xf32>
    %12 = math.exp %11 : vector<256x1xf32>
    %13 = vector.broadcast %10 : vector<256x1xf32> to vector<256x256xf32>
    %14 = arith.subf %6, %13 : vector<256x256xf32>
    %15 = math.exp %14 : vector<256x256xf32>
    %16 = arith.truncf %15 : vector<256x256xf32> to vector<256x256xbf16>
    %c0_8 = arith.constant 0 : index
    %c0_9 = arith.constant 0 : index
    %17 = vector.load %arg12[%c0_8, %c0_9] : memref<256x128xf32, #tpu.memory_space<vmem>>, vector<256x128xf32>
    %18 = vector.broadcast %12 : vector<256x1xf32> to vector<256x128xf32>
    %19 = arith.mulf %18, %17 : vector<256x128xf32>
    %c0_10 = arith.constant 0 : index
    %c0_11 = arith.constant 0 : index
    %c0_12 = arith.constant 0 : index
    %20 = vector.load %arg5[%c0_10, %c0_11, %c0_12] : memref<1x256x128xbf16, #tpu.memory_space<vmem>>, vector<1x256x128xbf16>
    %21 = vector.shape_cast %20 : vector<1x256x128xbf16> to vector<256x128xbf16>
    %cst_13 = arith.constant dense<0.000000e+00> : vector<256x128xf32>
    %22 = tpu.matmul %16, %21, %cst_13 {dimension_numbers = #tpu.dot_dimension_numbers<[1], [0], [0], [1], [0, 0, 1, 1], [], []>} : vector<256x256xbf16>, vector<256x128xbf16>, vector<256x128xf32> -> vector<256x128xf32>
    %23 = arith.addf %19, %22 : vector<256x128xf32>
    %c0_14 = arith.constant 0 : index
    %c0_15 = arith.constant 0 : index
    %24 = vector.load %arg12[%c0_14, %c0_15] : memref<256x128xf32, #tpu.memory_space<vmem>>, vector<256x128xf32>
    tpu.vector_store %arg12[%c0_14, %c0_15], %23 {strides = array<i32>} : memref<256x128xf32, #tpu.memory_space<vmem>>, vector<256x128xf32>,
    %c0_16 = arith.constant 0 : index
    %c0_17 = arith.constant 0 : index
    %25 = vector.load %arg11[%c0_16, %c0_17] : memref<256x1xf32, #tpu.memory_space<vmem>>, vector<256x1xf32>
    tpu.vector_store %arg11[%c0_16, %c0_17], %10 {strides = array<i32>} : memref<256x1xf32, #tpu.memory_space<vmem>>, vector<256x1xf32>,
    %c0_i32_18 = arith.constant 0 : i32
    %26 = arith.cmpi eq, %arg2, %c0_i32_18 : i32
    %27 = arith.extui %26 : i1 to i32
    %c0_i32_19 = arith.constant 0 : i32
    %28 = arith.cmpi ne, %27, %c0_i32_19 : i32
    scf.if %28 {
      %c0_20 = arith.constant 0 : index
      %c0_21 = arith.constant 0 : index
      %29 = vector.load %arg12[%c0_20, %c0_21] : memref<256x128xf32, #tpu.memory_space<vmem>>, vector<256x128xf32>
      %30 = vector.extract_strided_slice %29 {offsets = [0, 32], sizes = [256, 1], strides = [1, 1]} : vector<256x128xf32> to vector<256x1xf32>
      %31 = tpu.reciprocal %30 {approx = true} : vector<256x1xf32> -> vector<256x1xf32>
      %32 = vector.broadcast %31 : vector<256x1xf32> to vector<256x128xf32>
      %33 = arith.mulf %29, %32 : vector<256x128xf32>
      %c0_22 = arith.constant 0 : index
      %34 = memref.load %arg8[%c0_22] : memref<1xf32, #tpu.memory_space<smem>>
      %35 = vector.broadcast %34 : f32 to vector<256x128xf32>
      %36 = arith.mulf %35, %33 : vector<256x128xf32>
      %c0_23 = arith.constant 0 : index
      %c0_24 = arith.constant 0 : index
      %c0_25 = arith.constant 0 : index
      %37 = vector.load %arg3[%c0_23, %c0_24, %c0_25] : memref<1x256x128xf32, #tpu.memory_space<vmem>>, vector<1x256x128xf32>
      %38 = vector.shape_cast %37 : vector<1x256x128xf32> to vector<256x128xf32>
      %39 = arith.addf %36, %38 : vector<256x128xf32>
      %c0_26 = arith.constant 0 : index
      %c0_27 = arith.constant 0 : index
      %c0_28 = arith.constant 0 : index
      %40 = vector.load %arg9[%c0_26, %c0_27, %c0_28] : memref<1x256x128xf32, #tpu.memory_space<vmem>>, vector<1x256x128xf32>
      %41 = vector.shape_cast %40 : vector<1x256x128xf32> to vector<256x128xf32>
      %42 = vector.shape_cast %39 : vector<256x128xf32> to vector<1x256x128xf32>
      tpu.vector_store %arg9[%c0_26, %c0_27, %c0_28], %42 {strides = array<i32>} : memref<1x256x128xf32, #tpu.memory_space<vmem>>, vector<1x256x128xf32>,
    } else {
    }
    return
  }
  func.func @transform_0(%arg0: i32, %arg1: i32, %arg2: i32) -> (i32, i32, i32) {
    %c0_i32 = arith.constant 0 : i32
    %c0_i32_0 = arith.constant 0 : i32
    return %arg0, %arg1, %c0_i32 : i32, i32, i32
  }
  func.func @transform_1(%arg0: i32, %arg1: i32, %arg2: i32) -> (i32, i32, i32) {
    %c0_i32 = arith.constant 0 : i32
    %c0_i32_0 = arith.constant 0 : i32
    return %arg0, %c0_i32, %arg2 : i32, i32, i32
  }
  func.func @transform_2(%arg0: i32, %arg1: i32, %arg2: i32) -> (i32, i32, i32) {
    %c0_i32 = arith.constant 0 : i32
    %c0_i32_0 = arith.constant 0 : i32
    return %arg0, %arg2, %c0_i32 : i32, i32, i32
  }
  func.func @transform_3(%arg0: i32, %arg1: i32, %arg2: i32) -> (i32, i32) {
    %c0_i32 = arith.constant 0 : i32
    %c0_i32_0 = arith.constant 0 : i32
    %c0_i32_1 = arith.constant 0 : i32
    return %c0_i32, %c0_i32_0 : i32, i32
  }
  func.func @transform_4(%arg0: i32, %arg1: i32, %arg2: i32) -> (i32, i32) {
    %c0_i32 = arith.constant 0 : i32
    %c0_i32_0 = arith.constant 0 : i32
    %c0_i32_1 = arith.constant 0 : i32
    return %c0_i32, %c0_i32_0 : i32, i32
  }
  func.func @transform_5(%arg0: i32, %arg1: i32, %arg2: i32) -> i32 {
    %c0_i32 = arith.constant 0 : i32
    %c0_i32_0 = arith.constant 0 : i32
    return %c0_i32 : i32
  }
  func.func @transform_6(%arg0: i32, %arg1: i32, %arg2: i32) -> (i32, i32, i32) {
    %c0_i32 = arith.constant 0 : i32
    %c0_i32_0 = arith.constant 0 : i32
    return %arg0, %arg1, %c0_i32 : i32, i32, i32
  }
}

</mosaic_0001>

<bundles_post_ra>
// kernel: tpu_custom_call.1
= control target key start
LH: loop header
LB: loop body
LE: loop exit
PB: predicated region body
PF: predicated region fallthrough
CT: control target
= control target key end

     0   :  { %s5312_s0 = inlined_call_operand.hbm [shape: f32[2,256,128], index: 0, kind: input, shape index: {}]   ;;  %s5313_s1 = inlined_call_operand.hbm [shape: bf16[2,128,256], index: 1, kind: input, shape index: {}]   ;;  %s5314_s2 = inlined_call_operand.hbm [shape: bf16[2,256,128], index: 2, kind: input, shape index: {}]   ;;  %s5315_s3 = inlined_call_operand.hbm [shape: bf16[128,128], index: 3, kind: input, shape index: {}]   ;;  %s5316_s4 = inlined_call_operand.vmem [shape: f32[1,128], index: 4, kind: input, shape index: {}]   ;;  %s5317_s5 = inlined_call_operand.<no memory space> [shape: f32[1], index: 5, kind: input, shape index: {}]   ;;  %s5318_s6 = inlined_call_operand.hbm [shape: f32[2,256,128], index: 6, kind: output, shape index: {}]  }
   0x1   :  { %5377 = sst [smem:[#allocation77_spill]] %s5313_s1 }
   0x2   :  { %5378 = sst [smem:[#allocation78_spill]] %s5314_s2 }
   0x3   :  { %5379 = sst [smem:[#allocation79_spill]] %s5315_s3 }
   0x4   :  { %11 = sst [smem:[#allocation5]] %s5317_s5 }
   0x5   :  { %12 = vsyncpa [#allocation7], 0 }
   0x6   :  { %14 = vsyncpa [#allocation7 + $0x1], 0 }
   0x7   :  { %15 = vsyncpa [#allocation10], 0 }
   0x8   :  { %17 = vsyncpa [#allocation10 + $0x1], 0 }
   0x9   :  { %18 = vsyncpa [#allocation13], 0 }
   0xa   :  { %19 = vsyncpa [#allocation8], 0 }
   0xb   :  { %21 = vsyncpa [#allocation8 + $0x1], 0  ;;  %s4014_s23 = smov 0   ;;  %s4016_s24 = smov 0  }
   0xc   :  { %s4018_s25 = smov 0   ;;  %s4020_s26 = smov 0  }
   0xd   :  { %s4022_s27 = smov 0   ;;  %s4024_s28 = smov 0  }
   0xe LB: > { %5380 = sst [smem:[#allocation19_spill]] %s3952_s25  ;;  %s46_s5 = sadd.s32 1, %s3960_s27  ;;  %s3964_s28 = sphi %s4024_s28, %s27_s28   ;;  %s3960_s27 = sphi %s4022_s27, %s5521_s27   ;;  %s3956_s26 = sphi %s4020_s26, %s5520_s26   ;;  %s3952_s25 = sphi %s4018_s25, %s5516_s25   ;;  %s3948_s24 = sphi %s4016_s24, %s5519_s24   ;;  %s3944_s23 = sphi %s4014_s23, %s5518_s23  }
   0xf   : > { %5381 = sst [smem:[#allocation20_spill]] %s3964_s28  ;;  %s55_s29 = sadd.s32 1, %s3952_s25 }
  0x10   : > { %p48_p0 = scmp.ge.s32.totalorder %s46_s5, 2  ;;  %p62_p1 = scmp.ne.s32.totalorder %s3952_s25, %s3948_s24 }
  0x11   : > { %p63_p2 = scmp.eq.s32.totalorder %s3964_s28, 0  ;;  %p2975_p3 = scmp.ge.s32.totalorder %s3964_s28, 2 }
  0x12   : > { %s5523_s5 = smov (%p48_p0, %s46_s5), 0  ;;  %p3430_p5 = scmp.lt.s32.totalorder %s3964_s28, 2 }
  0x13   : > { %5382 = sst [smem:[#allocation21_spill]] %s5523_s5  ;;  %p64_p4 = por %p63_p2, %p62_p1 }
  0x14   : > { %s50_s30 = ssub.s32 %s3960_s27, %s5523_s5  ;;  %s4059_s7 = sand.u32 1, %s3952_s25  }
  0x15   : > { %p53_p6 = scmp.eq.s32.totalorder %s50_s30, 0  ;;  %p4061_p7 = pnand %p3430_p5, %p64_p4 }
  0x16   : > { %s283_s10 = sand.u32 1, %s3964_s28   ;;  %s2979_s11 = sshll.u32 %s4059_s7, 7 }
  0x17   : > { %s4066_s9 = scalar_select %p53_p6, %s3952_s25, %s55_s29  }
  0x18   : > { %s3221_s12 = sshll.u32 %s3960_s27, 7  ;;  %s5385_s1 = sld [smem:[#allocation77_spill]] }
  0x19   : > { %5384 = sst [smem:[#allocation22_spill]] %s4066_s9  ;;  %s287_s16 = scalar_lea.vmem [#allocation9], %s2979_s11 }
  0x1a   : > { %s297_s17 = sshll.u32 %s287_s16, 4  ;;  %s4074_s19 = scalar_lea.sflag [#allocation10], %s283_s10  ;;  %s298_s17 = int_to_ptr.vmem [resolvable:$true] %s297_s17 }
  0x1b   : > { %s5319_s20 = smov 128   ;;  %s5320_s21 = smov 8  }
  0x1c   : > { %s5386_s2 = sld [smem:[#allocation78_spill]]  ;;  %s311_s13 = scalar_lea.vmem [#allocation11], %s2979_s11 }
  0x1d   : > { %s321_s14 = sshll.u32 %s311_s13, 4  ;;  %s2972_s16 = sadd.s32 4294967294, %s3964_s28   ;;  %s4085_s14 = int_to_ptr.vmem [resolvable:$true] %s321_s14 }
  0x1e   : > { %s294_s15 = scalar_lea.hbm %s5385_s1, %s3221_s12  ;;  %p68_p8 = scmp.ne.s32.totalorder %s3948_s24, %s3944_s23 }
  0x1f   : > { %s295_s18 = sshll.u32 %s294_s15, 4  ;;  %s4090_s15 = sadd.s32 4294967295, %s3964_s28   ;;  %s296_s18 = int_to_ptr.hbm [resolvable:$true] %s295_s18 }
  0x20   : > { %3421 = dma.hbm_to_vmem [thread:$0]  (!%p4061_p7), %s296_s18, 2048, %s298_s17, %s4074_s19, %s5319_s20, %s5319_s20, %s5320_s21  }
  0x21   : > { %p69_p9 = scmp.eq.s32.totalorder %s4090_s15, 0  ;;  %p213_p10 = scmp.eq.s32.totalorder %s4090_s15, 1 }
  0x22   : > { %s318_s30 = scalar_lea.hbm %s5386_s2, %s3221_s12  ;;  %p219_p11 = scmp.eq.s32.totalorder %s2972_s16, 1 }
  0x23   : > { %s319_s10 = sshll.u32 %s318_s30, 4  ;;  %p2973_p12 = scmp.ge.s32.totalorder %s3964_s28, 1  ;;  %s4087_s10 = int_to_ptr.hbm [resolvable:$true] %s319_s10 }
  0x24   : > { %p4100_p13 = por %p69_p9, %p68_p8  ;;  %p4107_p0 = por %p213_p10, %p62_p1 }
  0x25   : > { %p4111_p2 = por %p219_p11, %p68_p8  ;;  %p226_p4 = scmp.lt.s32.totalorder %s3964_s28, 3 }
  0x26   : > { %s5391_s3 = sld [smem:[#allocation79_spill]]  ;;  %s3968_s13 = smov [#allocation12]  }
  0x27   : > { %s5389_s17 = scalar_select %p4111_p2, 1, 0 }
  0x28   : > { %p4119_p5 = pnand %p2973_p12, %p226_p4  ;;  %s239_s16 = sshll.u32 %s3968_s13, 4  ;;  %s240_s16 = int_to_ptr.vmem [resolvable:$true] %s239_s16 }
  0x29   : > { %5390 = sst [smem:[#allocation23_spill]] %s5389_s17  ;;  %s2976_s18 = sshll.u32 %s4059_s7, 8 }
  0x2a   : > { %p3411_p1 = pneg %p4119_p5  ;;  %s3220_s22 = sshll.u32 %s3960_s27, 8 }
  0x2b   : > { %s3969_s20 = smov 64   ;;  %s3970_s21 = smov 4  }
  0x2c   : > { %s237_s29 = sshll.u32 %s5391_s3, 4  ;;  %p3412_p6 = pnand %p3411_p1, %p69_p9  ;;  %s238_s29 = int_to_ptr.hbm [resolvable:$true] %s237_s29 }
  0x2d   : > { %s270_s3 = scalar_lea.hbm %s5312_s0, %s3220_s22  ;;  %s263_s5 = scalar_lea.vmem [#allocation6], %s2976_s18 }
  0x2e   : > { %3414 = dma.hbm_to_vmem [thread:$0]  (!%p3412_p6), %s238_s29, 1024, %s240_s16, [#allocation13], %s3969_s20, %s3969_s20, %s3970_s21  }
  0x2f   : > { %s273_s9 = sshll.u32 %s263_s5, 4  ;;  %s271_s25 = sshll.u32 %s270_s3, 4  ;;  %s274_s9 = int_to_ptr.vmem [resolvable:$true] %s273_s9  ;;  %s272_s25 = int_to_ptr.hbm [resolvable:$true] %s271_s25 }
  0x30   : > { %s260_s13 = scalar_lea.sflag [#allocation7], %s4059_s7  ;;  %s5393_s28 = smov 8  }
  0x31   : > { %s5394_s17 = smov 128   ;;  %333 = sbr.rel (%p4119_p5) target bundleno = 1363 (0x553), region = 44 }
  0x32   : > { %3418 = dma.hbm_to_vmem [thread:$0]  (!%p4061_p7), %s272_s25, 4096, %s274_s9, %s260_s13, %s5394_s17, %s5394_s17, %s5393_s28  }
  0x33   : > { %3424 = dma.hbm_to_vmem [thread:$0]  (!%p4061_p7), %s4087_s10, 2048, %s4085_s14, %s4074_s19, %s3969_s20, %s3969_s20, %s3970_s21  }
  0x36   : > { %s4146_s1 = sand.u32 1, %s3948_s24  }
  0x37   : > { %s2986_s2 = sshll.u32 %s4146_s1, 8  ;;  %s336_s3 = scalar_lea.sflag [#allocation7], %s4146_s1 }
  0x38   : > { %s4152_s5 = scalar_lea.vmem [#allocation6], %s2986_s2 }
  0x39   : > { %3927 = dma.done.wait (%p4100_p13), %s336_s3, 4096  }
  0x3a   : > { %3929 = vsyncadd (%p4100_p13), %s336_s3, 4294963200  ;;  %s345_s25 = sand.u32 1, %s4090_s15   ;;  %s2987_s28 = sshll.u32 %s4146_s1, 7 }
  0x3b   : > { %s346_s7 = scalar_lea.sflag [#allocation10], %s345_s25  ;;  %s4160_s8 = scalar_lea.vmem [#allocation9], %s2987_s28 }
  0x3c   : > { %3931 = dma.done.wait (%p4100_p13), %s346_s7, 4096  }
  0x3d   : > { %3933 = vsyncadd (%p4100_p13), %s346_s7, 4294963200  ;;  %s4166_s9 = scalar_lea.vmem [#allocation11], %s2987_s28 }
  0x3e   : > { %3935 = dma.done.wait (%p69_p9), [#allocation13], 1024  }
  0x3f   : > { %3937 = vsyncadd (%p69_p9), [#allocation13], 4294966272  ;;  %v3230_v0 = vld [vmem:[#allocation12 + $0x38] sm:$0xff]  ;;  %v3229_v1 = vld [vmem:[#allocation12 + $0x30] sm:$0xff]  ;;  %vm681_vm0 = vcmask 7168   ;;  %s2674_s21 = sld [smem:[#allocation5]] }
  0x40   : > { %528 = vmatpush.bf16.msra.mxu0 %v3230_v0  ;;  %3375 = vmatpush.bf16.msra.mxu1 %v3230_v0  ;;  %v3228_v2 = vld [vmem:[#allocation12 + $0x28] sm:$0xff]  ;;  %v3227_v3 = vld [vmem:[#allocation12 + $0x20] sm:$0xff]  ;;  %v3226_v4 = vld [vmem:[#allocation12 + $0x18] sm:$0xff]  ;;  %s5101_s14 = scalar_lea.vmem [#allocation14], %s2986_s2  ;;  %s3279_s10 = sshll.u32 %s3956_s26, 8 }
  0x41   : > { %3376 = vmatpush.bf16.msra.mxu2 %v3230_v0  ;;  %3377 = vmatpush.bf16.msra.mxu3 %v3230_v0  ;;  %v3225_v5 = vld [vmem:[#allocation12 + $0x10] sm:$0xff]  ;;  %v3224_v6 = vld [vmem:[#allocation12 + $0x8] sm:$0xff]  ;;  %v3223_v7 = vld [vmem:[#allocation12] sm:$0xff]  ;;  %s2818_s17 = scalar_lea.hbm %s5318_s6, %s3279_s10  ;;  %s2819_s29 = sshll.u32 %s5101_s14, 4  ;;  %s2820_s29 = int_to_ptr.vmem [resolvable:$true] %s2819_s29 }
  0x42   : > { %v412_v8 = vld [vmem:[%s4152_s5] sm:$0xff]  ;;  %v413_v9 = vld [vmem:[%s4152_s5 + $0x8] sm:$0xff]  ;;  %v414_v11 = vld [vmem:[%s4152_s5 + $0x10] sm:$0xff]  ;;  %s2821_s30 = sshll.u32 %s2818_s17, 4  ;;  %s2805_s26 = scalar_lea.sflag [#allocation8], %s4146_s1  ;;  %s2822_s30 = int_to_ptr.hbm [resolvable:$true] %s2821_s30 }
  0x43   : > { %v444_v10 = vpack.c.bf16 %v413_v9, %v412_v8  ;;  %v415_v12 = vld [vmem:[%s4152_s5 + $0x18] sm:$0xff]  ;;  %v420_v14 = vld [vmem:[%s4152_s5 + $0x40] sm:$0xff]  ;;  %v421_v15 = vld [vmem:[%s4152_s5 + $0x48] sm:$0xff]  ;;  %s3888_s16 = sshra.s32 %s2822_s30, 4  ;;  %s3894_s2 = scalar_lea.hbm %s5318_s6, 512  ;;  %s3889_s16 = int_to_ptr.hbm [resolvable:$true] %s3888_s16 }
  0x44   : > { %529 = vmatpush.bf16.msra.mxu0 %v3229_v1  ;;  %3378 = vmatpush.bf16.msra.mxu1 %v3229_v1  ;;  %v445_v13 = vpack.c.bf16 %v415_v12, %v414_v11  ;;  %v448_v16 = vpack.c.bf16 %v421_v15, %v420_v14  ;;  %v428_v17 = vld [vmem:[%s4152_s5 + $0x80] sm:$0xff]  ;;  %v429_v18 = vld [vmem:[%s4152_s5 + $0x88] sm:$0xff]  ;;  %v3261_v20 = vld [vmem:[%s4160_s8 + $0x74] sm:$0xf]  ;;  %s3890_s18 = scalar_lea.hbm %s3889_s16, 256  ;;  %p3895_p10 = scmp.lt.s32.totalorder %s3889_s16, %s5318_s6 }
  0x45   : > { %3379 = vmatpush.bf16.msra.mxu2 %v3229_v1  ;;  %3380 = vmatpush.bf16.msra.mxu3 %v3229_v1  ;;  %v452_v19 = vpack.c.bf16 %v429_v18, %v428_v17  ;;  %v3147_v21 = vld [vmem:[%s4160_s8 + $0x78] sm:$0xf0]  ;;  %v3145_v23 = vld [vmem:[%s4160_s8 + $0x70] sm:$0xf]  ;;  %v3262_v24 = vld [vmem:[%s4160_s8 + $0x74] sm:$0xf0]  ;;  %p3891_p7 = scmp.ne.s32.totalorder %s3889_s16, %s3890_s18  ;;  %p3896_p11 = scmp.lt.s32.totalorder %s3894_s2, %s3890_s18 }
  0x46   : > { %v3150_v22 = vor.u32 %v3261_v20, %v3147_v21  ;;  %v3146_v25 = vor.u32 %v3262_v24, %v3145_v23  ;;  %v3259_v26 = vld [vmem:[%s4160_s8 + $0x64] sm:$0xf]  ;;  %v3139_v27 = vld [vmem:[%s4160_s8 + $0x68] sm:$0xf0]  ;;  %v3137_v28 = vld [vmem:[%s4160_s8 + $0x60] sm:$0xf] }
  0x47   : > { %v3260_v29 = vld [vmem:[%s4160_s8 + $0x64] sm:$0xf0]  ;;  %v3142_v30 = vor.u32 %v3259_v26, %v3139_v27  ;;  %v3257_v32 = vld [vmem:[%s4160_s8 + $0x54] sm:$0xf]  ;;  %v3131_v33 = vld [vmem:[%s4160_s8 + $0x58] sm:$0xf0]  ;;  %p3892_p8 = pnand %p3891_p7, %p4107_p0  ;;  %p3897_p12 = por %p3896_p11, %p3895_p10 }
  0x48   : > { %530 = vmatpush.bf16.msra.mxu0 %v3228_v2  ;;  %3381 = vmatpush.bf16.msra.mxu1 %v3228_v2  ;;  %v3138_v31 = vor.u32 %v3260_v29, %v3137_v28  ;;  %v416_v34 = vld [vmem:[%s4152_s5 + $0x20] sm:$0xff]  ;;  %v417_v35 = vld [vmem:[%s4152_s5 + $0x28] sm:$0xff]  ;;  %v3134_v36 = vor.u32 %v3257_v32, %v3131_v33  ;;  %v422_v38 = vld [vmem:[%s4152_s5 + $0x50] sm:$0xff] }
  0x49   : > { %3382 = vmatpush.bf16.msra.mxu2 %v3228_v2  ;;  %3383 = vmatpush.bf16.msra.mxu3 %v3228_v2  ;;  %v446_v37 = vpack.c.bf16 %v417_v35, %v416_v34  ;;  %v423_v39 = vld [vmem:[%s4152_s5 + $0x58] sm:$0xff]  ;;  %v430_v40 = vld [vmem:[%s4152_s5 + $0x90] sm:$0xff]  ;;  %v3255_v47 = vld [vmem:[%s4160_s8 + $0x44] sm:$0xf]  ;;  %p3893_p9 = pneg %p3892_p8 }
  0x4a   : > { %v431_v41 = vld [vmem:[%s4152_s5 + $0x98] sm:$0xff]  ;;  %v449_v42 = vpack.c.bf16 %v423_v39, %v422_v38  ;;  %v3129_v44 = vld [vmem:[%s4160_s8 + $0x50] sm:$0xf]  ;;  %v3123_v48 = vld [vmem:[%s4160_s8 + $0x48] sm:$0xf0] }
  0x4b   : > { %v453_v43 = vpack.c.bf16 %v431_v41, %v430_v40  ;;  %v3258_v45 = vld [vmem:[%s4160_s8 + $0x54] sm:$0xf0]  ;;  %v3126_v49 = vor.u32 %v3255_v47, %v3123_v48  ;;  %v3121_v50 = vld [vmem:[%s4160_s8 + $0x40] sm:$0xf]  ;;  %v3256_v51 = vld [vmem:[%s4160_s8 + $0x44] sm:$0xf0]  ;;  %p3898_p13 = pnand %p3897_p12, %p3893_p9 }
  0x4c   : > { %531 = vmatpush.bf16.msra.mxu0 %v3227_v3  ;;  %3384 = vmatpush.bf16.msra.mxu1 %v3227_v3  ;;  %v3130_v46 = vor.u32 %v3258_v45, %v3129_v44  ;;  %v3253_v52 = vld [vmem:[%s4160_s8 + $0x34] sm:$0xf]  ;;  %v3122_v53 = vor.u32 %v3256_v51, %v3121_v50  ;;  %v3115_v54 = vld [vmem:[%s4160_s8 + $0x38] sm:$0xf0]  ;;  %v3113_v56 = vld [vmem:[%s4160_s8 + $0x30] sm:$0xf] }
  0x4d   : > { %3385 = vmatpush.bf16.msra.mxu2 %v3227_v3  ;;  %3386 = vmatpush.bf16.msra.mxu3 %v3227_v3  ;;  %v3118_v55 = vor.u32 %v3253_v52, %v3115_v54  ;;  %v3254_v57 = vld [vmem:[%s4160_s8 + $0x34] sm:$0xf0]  ;;  %v3251_v58 = vld [vmem:[%s4160_s8 + $0x24] sm:$0xf]  ;;  %v3107_v59 = vld [vmem:[%s4160_s8 + $0x28] sm:$0xf0] }
  0x4e   : > { %v418_v60 = vld [vmem:[%s4152_s5 + $0x30] sm:$0xff]  ;;  %v419_v61 = vld [vmem:[%s4152_s5 + $0x38] sm:$0xff]  ;;  %v3114_v62 = vor.u32 %v3254_v57, %v3113_v56  ;;  %v3110_v63 = vor.u32 %v3251_v58, %v3107_v59  ;;  %v424_v1 = vld [vmem:[%s4152_s5 + $0x60] sm:$0xff] }
  0x4f   : > { %v447_v0 = vpack.c.bf16 %v419_v61, %v418_v60  ;;  %v425_v2 = vld [vmem:[%s4152_s5 + $0x68] sm:$0xff]  ;;  %v432_v3 = vld [vmem:[%s4152_s5 + $0xa0] sm:$0xff]  ;;  %v427_v8 = vld [vmem:[%s4152_s5 + $0x78] sm:$0xff] }
  0x50   : > { %532 = vmatpush.bf16.msra.mxu0 %v3226_v4  ;;  %3387 = vmatpush.bf16.msra.mxu1 %v3226_v4  ;;  %v434_v9 = vld [vmem:[%s4152_s5 + $0xb0] sm:$0xff]  ;;  %v3252_v14 = vld [vmem:[%s4160_s8 + $0x24] sm:$0xf0]  ;;  %v3099_v17 = vld [vmem:[%s4160_s8 + $0x18] sm:$0xf0] }
  0x51   : > { %3388 = vmatpush.bf16.msra.mxu2 %v3226_v4  ;;  %3389 = vmatpush.bf16.msra.mxu3 %v3226_v4  ;;  %v433_v4 = vld [vmem:[%s4152_s5 + $0xa8] sm:$0xff]  ;;  %v3249_v15 = vld [vmem:[%s4160_s8 + $0x14] sm:$0xf]  ;;  %v3250_v20 = vld [vmem:[%s4160_s8 + $0x14] sm:$0xf0] }
  0x52   : > { %v3102_v18 = vor.u32 %v3249_v15, %v3099_v17  ;;  %v3091_v23 = vld [vmem:[%s4160_s8 + $0x8] sm:$0xf0]  ;;  %v3248_v26 = vld [vmem:[%s4160_s8 + $0x4] sm:$0xf0]  ;;  %v4231_v29 = vld [vmem:[%s5316_s4] ss:$0 sm:$0xff] }
  0x54   : > { %533 = vmatpush.bf16.msra.mxu0 %v3225_v5  ;;  %3390 = vmatpush.bf16.msra.mxu1 %v3225_v5 }
  0x55   : > { %3391 = vmatpush.bf16.msra.mxu2 %v3225_v5  ;;  %3392 = vmatpush.bf16.msra.mxu3 %v3225_v5  ;;  %v450_v5 = vpack.c.bf16 %v425_v2, %v424_v1 }
  0x58   : > { %534 = vmatpush.bf16.msra.mxu0 %v3224_v6  ;;  %3393 = vmatpush.bf16.msra.mxu1 %v3224_v6 }
  0x59   : > { %3394 = vmatpush.bf16.msra.mxu2 %v3224_v6  ;;  %3395 = vmatpush.bf16.msra.mxu3 %v3224_v6  ;;  %v454_v6 = vpack.c.bf16 %v433_v4, %v432_v3 }
  0x5c   : > { %535 = vmatpush.bf16.msra.mxu0 %v3223_v7  ;;  %3396 = vmatpush.bf16.msra.mxu1 %v3223_v7 }
  0x5d   : > { %3397 = vmatpush.bf16.msra.mxu2 %v3223_v7  ;;  %3398 = vmatpush.bf16.msra.mxu3 %v3223_v7  ;;  %v426_v7 = vld [vmem:[%s4152_s5 + $0x70] sm:$0xff] }
  0x5e   : > { %v451_v11 = vpack.c.bf16 %v427_v8, %v426_v7 }
  0x5f   : > { %536 = vmatmul.bf16.vlgmr.msra.gmra.mxu0 %v444_v10  ;;  %556 = vmatmul.bf16.vlgmr.msra.gmra.mxu1 %v448_v16  ;;  %v435_v10 = vld [vmem:[%s4152_s5 + $0xb8] sm:$0xff] }
  0x60   : > { %576 = vmatmul.bf16.vlgmr.msra.gmra.mxu2 %v452_v19  ;;  %970 = vmatpush.bf16.msrb.mxu1 %v3146_v25  ;;  %v455_v12 = vpack.c.bf16 %v435_v10, %v434_v9  ;;  %v3097_v19 = vld [vmem:[%s4160_s8 + $0x10] sm:$0xf]  ;;  %v3089_v25 = vld [vmem:[%s4160_s8] sm:$0xf] }
  0x61   : > { %1059 = vmatpush.bf16.msrb.mxu2 %v3150_v22  ;;  %v3098_v21 = vor.u32 %v3250_v20, %v3097_v19  ;;  %v3247_v22 = vld [vmem:[%s4160_s8 + $0x4] sm:$0xf]  ;;  %v3090_v27 = vor.u32 %v3248_v26, %v3089_v25 }
  0x62   : > { %v3094_v24 = vor.u32 %v3247_v22, %v3091_v23  ;;  %v436_v22 = vld [vmem:[%s4152_s5 + $0xc0] sm:$0xff]  ;;  %v437_v23 = vld [vmem:[%s4152_s5 + $0xc8] sm:$0xff] }
  0x63   : > { %v456_v25 = vpack.c.bf16 %v437_v23, %v436_v22  ;;  %v3971_v22 = vmov -inf  }
  0x64   : > { %971 = vmatpush.bf16.msrb.mxu1 %v3138_v31  ;;  %682 = vst.msk [vmem:[#allocation3] sm:$0xff] %vm681_vm0, %v3971_v22 }
  0x65   : > { %1060 = vmatpush.bf16.msrb.mxu2 %v3142_v30  ;;  %596 = vmatmul.bf16.vlgmr.msra.gmra.mxu3 %v456_v25  ;;  %683 = vst.msk [vmem:[#allocation3 + $0x8] sm:$0xff] %vm681_vm0, %v3971_v22 }
  0x66   : > { %684 = vst.msk [vmem:[#allocation3 + $0x10] sm:$0xff] %vm681_vm0, %v3971_v22 }
  0x67   : > { %685 = vst.msk [vmem:[#allocation3 + $0x18] sm:$0xff] %vm681_vm0, %v3971_v22 }
  0x68   : > { %972 = vmatpush.bf16.msrb.mxu1 %v3130_v46  ;;  %686 = vst.msk [vmem:[#allocation3 + $0x20] sm:$0xff] %vm681_vm0, %v3971_v22 }
  0x69   : > { %1061 = vmatpush.bf16.msrb.mxu2 %v3134_v36  ;;  %687 = vst.msk [vmem:[#allocation3 + $0x28] sm:$0xff] %vm681_vm0, %v3971_v22 }
  0x6a   : > { %688 = vst.msk [vmem:[#allocation3 + $0x30] sm:$0xff] %vm681_vm0, %v3971_v22 }
  0x6b   : > { %689 = vst.msk [vmem:[#allocation3 + $0x38] sm:$0xff] %vm681_vm0, %v3971_v22 }
  0x6c   : > { %973 = vmatpush.bf16.msrb.mxu1 %v3122_v53  ;;  %690 = vst.msk [vmem:[#allocation3 + $0x40] sm:$0xff] %vm681_vm0, %v3971_v22 }
  0x6d   : > { %1062 = vmatpush.bf16.msrb.mxu2 %v3126_v49  ;;  %691 = vst.msk [vmem:[#allocation3 + $0x48] sm:$0xff] %vm681_vm0, %v3971_v22 }
  0x6e   : > { %692 = vst.msk [vmem:[#allocation3 + $0x50] sm:$0xff] %vm681_vm0, %v3971_v22 }
  0x6f   : > { %541 = vmatmul.bf16.gmra.mxu0 %v445_v13  ;;  %561 = vmatmul.bf16.gmra.mxu1 %v449_v42  ;;  %v3105_v13 = vld [vmem:[%s4160_s8 + $0x20] sm:$0xf]  ;;  %693 = vst.msk [vmem:[#allocation3 + $0x58] sm:$0xff] %vm681_vm0, %v3971_v22 }
  0x70   : > { %581 = vmatmul.bf16.gmra.mxu2 %v453_v43  ;;  %974 = vmatpush.bf16.msrb.mxu1 %v3114_v62  ;;  %v3106_v16 = vor.u32 %v3252_v14, %v3105_v13  ;;  %694 = vst.msk [vmem:[#allocation3 + $0x60] sm:$0xff] %vm681_vm0, %v3971_v22 }
  0x71   : > { %1063 = vmatpush.bf16.msrb.mxu2 %v3118_v55  ;;  %695 = vst.msk [vmem:[#allocation3 + $0x68] sm:$0xff] %vm681_vm0, %v3971_v22 }
  0x72   : > { %696 = vst.msk [vmem:[#allocation3 + $0x70] sm:$0xff] %vm681_vm0, %v3971_v22 }
  0x73   : > { %697 = vst.msk [vmem:[#allocation3 + $0x78] sm:$0xff] %vm681_vm0, %v3971_v22 }
  0x74   : > { %975 = vmatpush.bf16.msrb.mxu1 %v3106_v16  ;;  %698 = vst.msk [vmem:[#allocation3 + $0x80] sm:$0xff] %vm681_vm0, %v3971_v22 }
  0x75   : > { %1064 = vmatpush.bf16.msrb.mxu2 %v3110_v63  ;;  %699 = vst.msk [vmem:[#allocation3 + $0x88] sm:$0xff] %vm681_vm0, %v3971_v22 }
  0x76   : > { %700 = vst.msk [vmem:[#allocation3 + $0x90] sm:$0xff] %vm681_vm0, %v3971_v22 }
  0x77   : > { %701 = vst.msk [vmem:[#allocation3 + $0x98] sm:$0xff] %vm681_vm0, %v3971_v22 }
  0x78   : > { %976 = vmatpush.bf16.msrb.mxu1 %v3098_v21  ;;  %702 = vst.msk [vmem:[#allocation3 + $0xa0] sm:$0xff] %vm681_vm0, %v3971_v22 }
  0x79   : > { %1065 = vmatpush.bf16.msrb.mxu2 %v3102_v18  ;;  %703 = vst.msk [vmem:[#allocation3 + $0xa8] sm:$0xff] %vm681_vm0, %v3971_v22 }
  0x7a   : > { %704 = vst.msk [vmem:[#allocation3 + $0xb0] sm:$0xff] %vm681_vm0, %v3971_v22 }
  0x7b   : > { %705 = vst.msk [vmem:[#allocation3 + $0xb8] sm:$0xff] %vm681_vm0, %v3971_v22 }
  0x7c   : > { %977 = vmatpush.bf16.msrb.mxu1 %v3090_v27  ;;  %706 = vst.msk [vmem:[#allocation3 + $0xc0] sm:$0xff] %vm681_vm0, %v3971_v22 }
  0x7d   : > { %1066 = vmatpush.bf16.msrb.mxu2 %v3094_v24  ;;  %707 = vst.msk [vmem:[#allocation3 + $0xc8] sm:$0xff] %vm681_vm0, %v3971_v22 }
  0x7e   : > { %708 = vst.msk [vmem:[#allocation3 + $0xd0] sm:$0xff] %vm681_vm0, %v3971_v22 }
  0x7f   : > { %546 = vmatmul.bf16.gmra.mxu0 %v446_v37  ;;  %566 = vmatmul.bf16.gmra.mxu1 %v450_v5  ;;  %709 = vst.msk [vmem:[#allocation3 + $0xd8] sm:$0xff] %vm681_vm0, %v3971_v22 }
  0x80   : > { %586 = vmatmul.bf16.gmra.mxu2 %v454_v6  ;;  %710 = vst.msk [vmem:[#allocation3 + $0xe0] sm:$0xff] %vm681_vm0, %v3971_v22 }
  0x81   : > { %711 = vst.msk [vmem:[#allocation3 + $0xe8] sm:$0xff] %vm681_vm0, %v3971_v22 }
  0x82   : > { %712 = vst.msk [vmem:[#allocation3 + $0xf0] sm:$0xff] %vm681_vm0, %v3971_v22 }
  0x83   : > { %713 = vst.msk [vmem:[#allocation3 + $0xf8] sm:$0xff] %vm681_vm0, %v3971_v22 }
  0x8f   : > { %551 = vmatmul.bf16.gmra.mxu0 %v447_v0  ;;  %571 = vmatmul.bf16.gmra.mxu1 %v451_v11 }
  0x90   : > { %591 = vmatmul.bf16.gmra.mxu2 %v455_v12 }
  0xdc   : > { %v537_v28 = vpop.f32.mrf.mxu0  ;;  %v557_v37 = vpop.f32.mrf.mxu1 }
  0xdd   : > { %v538_v31 = vadd.f32 %v4231_v29, %v537_v28  ;;  %v558_v41 = vadd.f32 %v4231_v29, %v557_v37  ;;  %v438_v37 = vld [vmem:[%s4152_s5 + $0xd0] sm:$0xff] }
  0xe3   : > { %v577_v52 = vpop.f32.mrf.mxu2 }
  0xe4   : > { %v539_v30 = vpop.f32.mrf.mxu0  ;;  %v559_v43 = vpop.f32.mrf.mxu1  ;;  %v578_v59 = vadd.f32 %v4231_v29, %v577_v52 }
  0xe5   : > { %v540_v32 = vadd.f32 %v4231_v29, %v539_v30  ;;  %v560_v44 = vadd.f32 %v4231_v29, %v559_v43 }
  0xe7   : > { %v3283_v33 = vpack.c.bf16 %v540_v32, %v538_v31  ;;  %v3303_v45 = vpack.c.bf16 %v560_v44, %v558_v41 }
  0xe9   : > { %3284 = vst [vmem:[#allocation2 + $0x30] sm:$0xff] %v3283_v33  }
  0xea   : > { %3363 = vst [vmem:[#allocation2 + $0x50] sm:$0xff] %v3303_v45  }
  0xeb   : > { %v579_v60 = vpop.f32.mrf.mxu2 }
  0xec   : > { %v542_v34 = vpop.f32.mrf.mxu0  ;;  %v562_v48 = vpop.f32.mrf.mxu1  ;;  %v580_v61 = vadd.f32 %v4231_v29, %v579_v60 }
  0xed   : > { %v543_v38 = vadd.f32 %v4231_v29, %v542_v34  ;;  %v563_v53 = vadd.f32 %v4231_v29, %v562_v48 }
  0xee   : > { %v3323_v2 = vpack.c.bf16 %v580_v61, %v578_v59  ;;  %v440_v61 = vld [vmem:[%s4152_s5 + $0xe0] sm:$0xff] }
  0xf0   : > { %v3231_v35 = vld [vmem:[#allocation2 + $0x30] sm:$0xff]  ;;  %3367 = vst [vmem:[#allocation2 + $0x40] sm:$0xff] %v3323_v2  }
  0xf1   : > { %978 = vmatmul.bf16.vlgmr.msrb.gmra.mxu1 %v3231_v35  ;;  %1067 = vmatmul.bf16.vlgmr.msrb.gmra.mxu2 %v3231_v35  ;;  %v3235_v20 = vld [vmem:[#allocation2 + $0x50] sm:$0xff] }
  0xf3   : > { %v582_v4 = vpop.f32.mrf.mxu2 }
  0xf4   : > { %v544_v36 = vpop.f32.mrf.mxu0  ;;  %v564_v55 = vpop.f32.mrf.mxu1  ;;  %v583_v10 = vadd.f32 %v4231_v29, %v582_v4 }
  0xf5   : > { %v545_v39 = vadd.f32 %v4231_v29, %v544_v36  ;;  %v565_v56 = vadd.f32 %v4231_v29, %v564_v55 }
  0xf7   : > { %v3288_v40 = vpack.c.bf16 %v545_v39, %v543_v38  ;;  %v3308_v57 = vpack.c.bf16 %v565_v56, %v563_v53  ;;  %v439_v38 = vld [vmem:[%s4152_s5 + $0xd8] sm:$0xff]  ;;  %v3239_v41 = vld [vmem:[#allocation2 + $0x40] sm:$0xff] }
  0xf8   : > { %v457_v39 = vpack.c.bf16 %v439_v38, %v438_v37 }
  0xf9   : > { %3360 = vst [vmem:[#allocation2] sm:$0xff] %v3288_v40  }
  0xfa   : > { %3364 = vst [vmem:[#allocation2 + $0x68] sm:$0xff] %v3308_v57   ;;  %601 = vmatmul.bf16.gmra.mxu3 %v457_v39 }
  0xfb   : > { %v584_v11 = vpop.f32.mrf.mxu2 }
  0xfc   : > { %v547_v42 = vpop.f32.mrf.mxu0  ;;  %v567_v63 = vpop.f32.mrf.mxu1  ;;  %v585_v12 = vadd.f32 %v4231_v29, %v584_v11 }
  0xfd   : > { %v548_v49 = vadd.f32 %v4231_v29, %v547_v42  ;;  %v568_v5 = vadd.f32 %v4231_v29, %v567_v63 }
  0xfe   : > { %v3328_v14 = vpack.c.bf16 %v585_v12, %v583_v10 }
 0x100   : > { %v3232_v46 = vld [vmem:[#allocation2] sm:$0xff]  ;;  %3368 = vst [vmem:[#allocation2 + $0x20] sm:$0xff] %v3328_v14   ;;  %v597_v14 = vpop.f32.mrf.mxu3 }
 0x101   : > { %983 = vmatmul.bf16.gmra.mxu1 %v3232_v46  ;;  %1072 = vmatmul.bf16.gmra.mxu2 %v3232_v46  ;;  %v3236_v30 = vld [vmem:[#allocation2 + $0x68] sm:$0xff] }
 0x103   : > { %v587_v15 = vpop.f32.mrf.mxu2 }
 0x104   : > { %v549_v47 = vpop.f32.mrf.mxu0  ;;  %v569_v6 = vpop.f32.mrf.mxu1  ;;  %v588_v21 = vadd.f32 %v4231_v29, %v587_v15 }
 0x105   : > { %v550_v50 = vadd.f32 %v4231_v29, %v549_v47  ;;  %v570_v7 = vadd.f32 %v4231_v29, %v569_v6 }
 0x107   : > { %v3293_v51 = vpack.c.bf16 %v550_v50, %v548_v49  ;;  %v3313_v8 = vpack.c.bf16 %v570_v7, %v568_v5  ;;  %v3240_v48 = vld [vmem:[#allocation2 + $0x20] sm:$0xff]  ;;  %v442_v7 = vld [vmem:[%s4152_s5 + $0xf0] sm:$0xff] }
 0x109   : > { %3361 = vst [vmem:[#allocation2 + $0x58] sm:$0xff] %v3293_v51  }
 0x10a   : > { %3365 = vst [vmem:[#allocation2 + $0x8] sm:$0xff] %v3313_v8   ;;  %v443_v8 = vld [vmem:[%s4152_s5 + $0xf8] sm:$0xff] }
 0x10b   : > { %v589_v24 = vpop.f32.mrf.mxu2  ;;  %v459_v10 = vpack.c.bf16 %v443_v8, %v442_v7 }
 0x10c   : > { %v552_v54 = vpop.f32.mrf.mxu0  ;;  %v572_v13 = vpop.f32.mrf.mxu1  ;;  %v590_v26 = vadd.f32 %v4231_v29, %v589_v24 }
 0x10d   : > { %v553_v0 = vadd.f32 %v4231_v29, %v552_v54  ;;  %v573_v16 = vadd.f32 %v4231_v29, %v572_v13 }
 0x10e   : > { %v3333_v27 = vpack.c.bf16 %v590_v26, %v588_v21 }
 0x110   : > { %v3233_v58 = vld [vmem:[#allocation2 + $0x58] sm:$0xff]  ;;  %3369 = vst [vmem:[#allocation2 + $0x10] sm:$0xff] %v3333_v27  }
 0x111   : > { %988 = vmatmul.bf16.gmra.mxu1 %v3233_v58  ;;  %1077 = vmatmul.bf16.gmra.mxu2 %v3233_v58  ;;  %v3237_v35 = vld [vmem:[#allocation2 + $0x8] sm:$0xff] }
 0x113   : > { %v592_v28 = vpop.f32.mrf.mxu2 }
 0x114   : > { %v554_v62 = vpop.f32.mrf.mxu0  ;;  %v574_v17 = vpop.f32.mrf.mxu1  ;;  %v593_v31 = vadd.f32 %v4231_v29, %v592_v28 }
 0x115   : > { %v555_v1 = vadd.f32 %v4231_v29, %v554_v62  ;;  %v575_v18 = vadd.f32 %v4231_v29, %v574_v17  ;;  %v441_v62 = vld [vmem:[%s4152_s5 + $0xe8] sm:$0xff] }
 0x117   : > { %v3298_v3 = vpack.c.bf16 %v555_v1, %v553_v0  ;;  %v3318_v19 = vpack.c.bf16 %v575_v18, %v573_v16  ;;  %v3241_v55 = vld [vmem:[#allocation2 + $0x10] sm:$0xff]  ;;  %v458_v0 = vpack.c.bf16 %v441_v62, %v440_v61  ;;  %v598_v18 = vadd.f32 %v4231_v29, %v597_v14 }
 0x119   : > { %3362 = vst [vmem:[#allocation2 + $0x18] sm:$0xff] %v3298_v3   ;;  %606 = vmatmul.bf16.gmra.mxu3 %v458_v0 }
 0x11a   : > { %3366 = vst [vmem:[#allocation2 + $0x48] sm:$0xff] %v3318_v19   ;;  %v599_v19 = vpop.f32.mrf.mxu3 }
 0x11b   : > { %v594_v32 = vpop.f32.mrf.mxu2 }
 0x11c   : > { %v595_v33 = vadd.f32 %v4231_v29, %v594_v32 }
 0x11e   : > { %v3338_v34 = vpack.c.bf16 %v595_v33, %v593_v31 }
 0x120   : > { %v3234_v9 = vld [vmem:[#allocation2 + $0x18] sm:$0xff]  ;;  %3370 = vst [vmem:[#allocation2 + $0x38] sm:$0xff] %v3338_v34  }
 0x121   : > { %993 = vmatmul.bf16.gmra.mxu1 %v3234_v9  ;;  %1082 = vmatmul.bf16.gmra.mxu2 %v3234_v9  ;;  %v3238_v36 = vld [vmem:[#allocation2 + $0x48] sm:$0xff] }
 0x127   : > { %v3242_v1 = vld [vmem:[#allocation2 + $0x38] sm:$0xff] }
 0x129   : > { %611 = vmatmul.bf16.gmra.mxu3 %v459_v10 }
 0x131   : > { %998 = vmatmul.bf16.gmra.mxu1 %v3235_v20  ;;  %1087 = vmatmul.bf16.gmra.mxu2 %v3235_v20  ;;  %v600_v20 = vadd.f32 %v4231_v29, %v599_v19 }
 0x133   : > { %v3343_v21 = vpack.c.bf16 %v600_v20, %v598_v18  ;;  %v4431_v20 = vld [vmem:[#allocation3 + $0x18] sm:$0xff] }
 0x134   : > { %5405 = vst [vmem:[#allocation34_spill] sm:$0xff] %v4431_v20 }
 0x135   : > { %3371 = vst [vmem:[#allocation2 + $0x60] sm:$0xff] %v3343_v21  }
 0x13c   : > { %v3243_v26 = vld [vmem:[#allocation2 + $0x60] sm:$0xff] }
 0x141   : > { %1003 = vmatmul.bf16.gmra.mxu1 %v3236_v30  ;;  %1092 = vmatmul.bf16.gmra.mxu2 %v3236_v30 }
 0x151   : > { %1008 = vmatmul.bf16.gmra.mxu1 %v3237_v35  ;;  %1097 = vmatmul.bf16.gmra.mxu2 %v3237_v35 }
 0x161   : > { %1013 = vmatmul.bf16.gmra.mxu1 %v3238_v36  ;;  %1102 = vmatmul.bf16.gmra.mxu2 %v3238_v36  ;;  %v3972_v36 = vmov 0  }
 0x162   : > { %3491 = vset.pattern.permute.xlu2 %v3972_v36  ;;  %3492 = vset.pattern.permute.xlu0 %v3972_v36 }
 0x163   : > { %3493 = vset.pattern.permute.xlu1 %v3972_v36 }
 0x16e   : > { %v4261_v40 = vpop.f32.mrf.mxu1 }
 0x171   : > { %1018 = vmatmul.bf16.gmra.mxu1 %v3239_v41  ;;  %1107 = vmatmul.bf16.gmra.mxu2 %v3239_v41  ;;  %v4389_v41 = vld [vmem:[#allocation3] sm:$0xff] }
 0x172   : > { %5397 = vst [vmem:[#allocation26_spill] sm:$0xff] %v4389_v41 }
 0x174   : > { %v4263_v42 = vpop.f32.mrf.mxu2 }
 0x175   : > { %v1180_v43 = vmax.f32 %v4261_v40, %v4263_v42 }
 0x176   : > { %v4267_v44 = vpop.f32.mrf.mxu1 }
 0x177   : > { %1181 = vmax.xlane.f32.xlu0 %v1180_v43 }
 0x17c   : > { %v4269_v45 = vpop.f32.mrf.mxu2 }
 0x17d   : > { %v1183_v46 = vmax.f32 %v4267_v44, %v4269_v45 }
 0x17e   : > { %v4273_v47 = vpop.f32.mrf.mxu1 }
 0x17f   : > { %1184 = vmax.xlane.f32.xlu0 %v1183_v46 }
 0x181   : > { %1023 = vmatmul.bf16.gmra.mxu1 %v3240_v48  ;;  %1112 = vmatmul.bf16.gmra.mxu2 %v3240_v48 }
 0x184   : > { %v4275_v49 = vpop.f32.mrf.mxu2 }
 0x185   : > { %v1186_v50 = vmax.f32 %v4273_v47, %v4275_v49 }
 0x186   : > { %v4279_v51 = vpop.f32.mrf.mxu1 }
 0x187   : > { %1187 = vmax.xlane.f32.xlu1 %v1186_v50 }
 0x18c   : > { %v4281_v52 = vpop.f32.mrf.mxu2 }
 0x18d   : > { %v1189_v53 = vmax.f32 %v4279_v51, %v4281_v52 }
 0x18e   : > { %v4285_v54 = vpop.f32.mrf.mxu1 }
 0x18f   : > { %1190 = vmax.xlane.f32.xlu1 %v1189_v53 }
 0x191   : > { %1028 = vmatmul.bf16.gmra.mxu1 %v3241_v55  ;;  %1117 = vmatmul.bf16.gmra.mxu2 %v3241_v55 }
 0x194   : > { %v4287_v56 = vpop.f32.mrf.mxu2 }
 0x195   : > { %v1192_v57 = vmax.f32 %v4285_v54, %v4287_v56 }
 0x196   : > { %v4291_v58 = vpop.f32.mrf.mxu1 }
 0x197   : > { %1193 = vmax.xlane.f32.xlu2 %v1192_v57  ;;  %v602_v57 = vpop.f32.mrf.mxu3 }
 0x19c   : > { %v4293_v59 = vpop.f32.mrf.mxu2 }
 0x19d   : > { %v1195_v60 = vmax.f32 %v4291_v58, %v4293_v59 }
 0x19e   : > { %v4299_v63 = vpop.f32.mrf.mxu1 }
 0x19f   : > { %1196 = vmax.xlane.f32.xlu2 %v1195_v60  ;;  %v4404_v60 = vld [vmem:[#allocation3 + $0x8] sm:$0xff]  ;;  %v604_v8 = vpop.f32.mrf.mxu3 }
 0x1a0   : > { %v605_v10 = vadd.f32 %v4231_v29, %v604_v8 }
 0x1a1   : > { %1033 = vmatmul.bf16.gmra.mxu1 %v3242_v1  ;;  %1122 = vmatmul.bf16.gmra.mxu2 %v3242_v1 }
 0x1a4   : > { %v4301_v2 = vpop.f32.mrf.mxu2 }
 0x1a5   : > { %v1198_v3 = vmax.f32 %v4299_v63, %v4301_v2 }
 0x1a6   : > { %v4305_v4 = vpop.f32.mrf.mxu1 }
 0x1a7   : > { %1199 = vmax.xlane.f32.xlu0 %v1198_v3  ;;  %v603_v3 = vadd.f32 %v4231_v29, %v602_v57  ;;  %v607_v19 = vpop.f32.mrf.mxu3 }
 0x1a9   : > { %v3348_v14 = vpack.c.bf16 %v605_v10, %v603_v3  ;;  %v4468_v10 = vld [vmem:[#allocation3 + $0x30] sm:$0xff] }
 0x1aa   : > { %5413 = vst [vmem:[#allocation42_spill] sm:$0xff] %v4468_v10 }
 0x1ab   : > { %3372 = vst [vmem:[#allocation2 + $0x70] sm:$0xff] %v3348_v14  }
 0x1ac   : > { %v4307_v5 = vpop.f32.mrf.mxu2 }
 0x1ad   : > { %v1201_v6 = vmax.f32 %v4305_v4, %v4307_v5 }
 0x1ae   : > { %v4313_v9 = vpop.f32.mrf.mxu1 }
 0x1af   : > { %1202 = vmax.xlane.f32.xlu1 %v1201_v6  ;;  %v4494_v6 = vld [vmem:[#allocation3 + $0x40] sm:$0xff] }
 0x1b0   : > { %5418 = vst [vmem:[#allocation47_spill] sm:$0xff] %v4494_v6 }
 0x1b1   : > { %1127 = vmatmul.bf16.gmra.mxu2 %v3243_v26  ;;  %1038 = vmatmul.bf16.gmra.mxu1 %v3243_v26 }
 0x1b2   : > { %v3244_v21 = vld [vmem:[#allocation2 + $0x70] sm:$0xff] }
 0x1b4   : > { %v4315_v11 = vpop.f32.mrf.mxu2 }
 0x1b5   : > { %v1204_v12 = vmax.f32 %v4313_v9, %v4315_v11 }
 0x1b6   : > { %v4319_v13 = vpop.f32.mrf.mxu1 }
 0x1b7   : > { %1205 = vmax.xlane.f32.xlu2 %v1204_v12  ;;  %v4421_v12 = vld [vmem:[#allocation3 + $0x10] sm:$0xff] }
 0x1b8   : > { %5403 = vst [vmem:[#allocation32_spill] sm:$0xff] %v4421_v12 }
 0x1bc   : > { %v4321_v15 = vpop.f32.mrf.mxu2 }
 0x1bd   : > { %v1207_v16 = vmax.f32 %v4319_v13, %v4321_v15 }
 0x1be   : > { %v4325_v17 = vpop.f32.mrf.mxu1 }
 0x1bf   : > { %1208 = vmax.xlane.f32.xlu0 %v1207_v16 }
 0x1c1   : > { %1132 = vmatmul.bf16.gmra.mxu2 %v3244_v21  ;;  %1043 = vmatmul.bf16.gmra.mxu1 %v3244_v21 }
 0x1c4   : > { %v4330_v23 = vpop.f32.mrf.mxu2 }
 0x1c5   : > { %v1210_v24 = vmax.f32 %v4325_v17, %v4330_v23 }
 0x1c6   : > { %v4335_v25 = vpop.f32.mrf.mxu1 }
 0x1c7   : > { %1211 = vmax.xlane.f32.xlu1 %v1210_v24 }
 0x1cc   : > { %v4343_v27 = vpop.f32.mrf.mxu2 }
 0x1cd   : > { %v1213_v28 = vmax.f32 %v4335_v25, %v4343_v27 }
 0x1ce   : > { %v4349_v30 = vpop.f32.mrf.mxu1 }
 0x1cf   : > { %1214 = vmax.xlane.f32.xlu2 %v1213_v28 }
 0x1d4   : > { %v4357_v31 = vpop.f32.mrf.mxu2 }
 0x1d5   : > { %v1216_v32 = vmax.f32 %v4349_v30, %v4357_v31 }
 0x1d6   : > { %v4363_v33 = vpop.f32.mrf.mxu1 }
 0x1d7   : > { %1217 = vmax.xlane.f32.xlu0 %v1216_v32  ;;  %v4443_v32 = vld [vmem:[#allocation3 + $0x20] sm:$0xff] }
 0x1dc   : > { %v4371_v34 = vpop.f32.mrf.mxu2 }
 0x1dd   : > { %v1219_v35 = vmax.f32 %v4363_v33, %v4371_v34 }
 0x1de   : > { %v4379_v37 = vpop.f32.mrf.mxu1 }
 0x1df   : > { %1220 = vmax.xlane.f32.xlu1 %v1219_v35  ;;  %5395 = vst [vmem:[#allocation24_spill] sm:$0xff] %v4379_v37 }
 0x1e4   : > { %v4385_v38 = vpop.f32.mrf.mxu2 }
 0x1e5   : > { %5396 = vst [vmem:[#allocation25_spill] sm:$0xff] %v4385_v38  ;;  %v1222_v39 = vmax.f32 %v4379_v37, %v4385_v38 }
 0x1e6   : > { %v4391_v43 = vpop.f32.mrf.mxu1 }
 0x1e7   : > { %1223 = vmax.xlane.f32.xlu2 %v1222_v39  ;;  %5398 = vst [vmem:[#allocation27_spill] sm:$0xff] %v4391_v43 }
 0x1ea   : > { %v1182_v46 = vpop.xlane.xlu0 %1181 }
 0x1eb   : > { %v4394_v48 = vmax.f32 %v4389_v41, %v1182_v46 }
 0x1ec   : > { %v4396_v50 = vpop.f32.mrf.mxu2 }
 0x1ed   : > { %5399 = vst [vmem:[#allocation28_spill] sm:$0xff] %v4394_v48  ;;  %v1225_v55 = vmax.f32 %v4391_v43, %v4396_v50 }
 0x1ee   : > { %5400 = vst [vmem:[#allocation29_spill] sm:$0xff] %v4396_v50  ;;  %v4409_v0 = vpop.f32.mrf.mxu1  ;;  %v4595_v50 = vld [vmem:[#allocation3 + $0x80] sm:$0xff] }
 0x1ef   : > { %2383 = vst.msk [vmem:[#allocation3] sm:$0xff] %vm681_vm0, %v4394_v48  ;;  %1226 = vmax.xlane.f32.xlu0 %v1225_v55  ;;  %v4455_v55 = vld [vmem:[#allocation3 + $0x28] sm:$0xff] }
 0x1f0   : > { %5401 = vst [vmem:[#allocation30_spill] sm:$0xff] %v4409_v0 }
 0x1f1   : > { %5409 = vst [vmem:[#allocation38_spill] sm:$0xff] %v4455_v55 }
 0x1f2   : > { %v1185_v61 = vpop.xlane.xlu0 %1184  ;;  %5432 = vst [vmem:[#allocation61_spill] sm:$0xff] %v4595_v50 }
 0x1f3   : > { %v4407_v62 = vmax.f32 %v4404_v60, %v1185_v61 }
 0x1f4   : > { %v4411_v1 = vpop.f32.mrf.mxu2 }
 0x1f5   : > { %5402 = vst [vmem:[#allocation31_spill] sm:$0xff] %v4411_v1  ;;  %v1228_v7 = vmax.f32 %v4409_v0, %v4411_v1 }
 0x1f6   : > { %2384 = vst.msk [vmem:[#allocation3 + $0x8] sm:$0xff] %vm681_vm0, %v4407_v62  ;;  %v4445_v35 = vpop.f32.mrf.mxu1 }
 0x1f7   : > { %1229 = vmax.xlane.f32.xlu1 %v1228_v7  ;;  %5408 = vst [vmem:[#allocation37_spill] sm:$0xff] %v4445_v35 }
 0x1fa   : > { %v1188_v16 = vpop.xlane.xlu1 %1187 }
 0x1fb   : > { %v4424_v18 = vmax.f32 %v4421_v12, %v1188_v16  ;;  %v609_v12 = vpop.f32.mrf.mxu3 }
 0x1fc   : > { %v4441_v28 = vpop.f32.mrf.mxu2  ;;  %v610_v1 = vadd.f32 %v4231_v29, %v609_v12 }
 0x1fd   : > { %5404 = vst [vmem:[#allocation33_spill] sm:$0xff] %v4424_v18  ;;  %v1231_v53 = vmax.f32 %v4445_v35, %v4441_v28 }
 0x1fe   : > { %2385 = vst.msk [vmem:[#allocation3 + $0x10] sm:$0xff] %vm681_vm0, %v4424_v18  ;;  %v4462_v7 = vpop.f32.mrf.mxu1 }
 0x1ff   : > { %1406 = vperm.xlu2 %3491, %v4394_v48   ;;  %5407 = vst [vmem:[#allocation36_spill] sm:$0xff] %v4441_v28 }
 0x200   : > { %5412 = vst [vmem:[#allocation41_spill] sm:$0xff] %v4462_v7 }
 0x202   : > { %v1191_v22 = vpop.xlane.xlu1 %1190 }
 0x203   : > { %v4434_v24 = vmax.f32 %v4431_v20, %v1191_v22  ;;  %1411 = vperm.xlu0 %3492, %v4407_v62   ;;  %v612_v28 = vpop.f32.mrf.mxu3 }
 0x204   : > { %v4457_v57 = vpop.f32.mrf.mxu2 }
 0x205   : > { %5406 = vst [vmem:[#allocation35_spill] sm:$0xff] %v4434_v24  ;;  %v1234_v26 = vmax.f32 %v4462_v7, %v4457_v57  ;;  %v3267_v7 = vld [vmem:[%s4166_s9 + $0x20] sm:$0xff] }
 0x206   : > { %2386 = vst.msk [vmem:[#allocation3 + $0x18] sm:$0xff] %vm681_vm0, %v4434_v24  ;;  %v4477_v22 = vpop.f32.mrf.mxu1 }
 0x207   : > { %5410 = vst [vmem:[#allocation39_spill] sm:$0xff] %v4457_v57 }
 0x208   : > { %5415 = vst [vmem:[#allocation44_spill] sm:$0xff] %v4477_v22 }
 0x20a   : > { %v1194_v36 = vpop.xlane.xlu2 %1193 }
 0x20b   : > { %v4448_v39 = vmax.f32 %v4443_v32, %v1194_v36  ;;  %v4479_v36 = vld [vmem:[#allocation3 + $0x38] sm:$0xff] }
 0x20c   : > { %v4473_v21 = vpop.f32.mrf.mxu2 }
 0x20d   : > { %2387 = vst.msk [vmem:[#allocation3 + $0x20] sm:$0xff] %vm681_vm0, %v4448_v39 }
 0x20e   : > { %5414 = vst [vmem:[#allocation43_spill] sm:$0xff] %v4473_v21  ;;  %v4492_v46 = vpop.f32.mrf.mxu1 }
 0x20f   : > { %5417 = vst [vmem:[#allocation46_spill] sm:$0xff] %v4492_v46 }
 0x210   : > { %1416 = vperm.xlu1 %3493, %v4424_v18  }
 0x212   : > { %v1197_v61 = vpop.xlane.xlu2 %1196 }
 0x213   : > { %v4460_v3 = vmax.f32 %v4455_v55, %v1197_v61 }
 0x215   : > { %5411 = vst [vmem:[#allocation40_spill] sm:$0xff] %v4460_v3 }
 0x216   : > { %2388 = vst.msk [vmem:[#allocation3 + $0x28] sm:$0xff] %vm681_vm0, %v4460_v3 }
 0x21a   : > { %v1200_v14 = vpop.xlane.xlu0 %1199 }
 0x21b   : > { %v4471_v16 = vmax.f32 %v4468_v10, %v1200_v14  ;;  %v4488_v14 = vpop.f32.mrf.mxu2  ;;  %v4584_v10 = vld [vmem:[#allocation3 + $0x78] sm:$0xff] }
 0x21c   : > { %5416 = vst [vmem:[#allocation45_spill] sm:$0xff] %v4488_v14 }
 0x21d   : > { %2389 = vst.msk [vmem:[#allocation3 + $0x30] sm:$0xff] %vm681_vm0, %v4471_v16 }
 0x21e   : > { %5429 = vst [vmem:[#allocation58_spill] sm:$0xff] %v4584_v10 }
 0x222   : > { %v1203_v61 = vpop.xlane.xlu1 %1202 }
 0x223   : > { %v4482_v8 = vmax.f32 %v4479_v36, %v1203_v61  ;;  %v608_v61 = vadd.f32 %v4231_v29, %v607_v19  ;;  %v4507_v35 = vpop.f32.mrf.mxu2  ;;  %v4509_v19 = vld [vmem:[#allocation3 + $0x48] sm:$0xff] }
 0x224   : > { %5420 = vst [vmem:[#allocation49_spill] sm:$0xff] %v4507_v35 }
 0x225   : > { %2390 = vst.msk [vmem:[#allocation3 + $0x38] sm:$0xff] %vm681_vm0, %v4482_v8 }
 0x226   : > { %5421 = vst [vmem:[#allocation50_spill] sm:$0xff] %v4509_v19 }
 0x228   : > { %1232 = vmax.xlane.f32.xlu2 %v1231_v53  ;;  %v3353_v53 = vpack.c.bf16 %v610_v1, %v608_v61  ;;  %v1237_v61 = vmax.f32 %v4477_v22, %v4473_v21  ;;  %v4532_v22 = vld [vmem:[#allocation3 + $0x58] sm:$0xff] }
 0x229   : > { %5423 = vst [vmem:[#allocation52_spill] sm:$0xff] %v4532_v22 }
 0x22a   : > { %v1206_v55 = vpop.xlane.xlu2 %1205  ;;  %3373 = vst [vmem:[#allocation2 + $0x78] sm:$0xff] %v3353_v53   ;;  %v613_v53 = vadd.f32 %v4231_v29, %v612_v28 }
 0x22b   : > { %v4498_v18 = vmax.f32 %v4494_v6, %v1206_v55  ;;  %v4511_v55 = vpop.f32.mrf.mxu1 }
 0x22c   : > { %5422 = vst [vmem:[#allocation51_spill] sm:$0xff] %v4511_v55  ;;  %v1243_v12 = vmax.f32 %v4511_v55, %v4507_v35 }
 0x22d   : > { %5419 = vst [vmem:[#allocation48_spill] sm:$0xff] %v4498_v18  ;;  %1235 = vmax.xlane.f32.xlu0 %v1234_v26  ;;  %v4520_v26 = vld [vmem:[#allocation3 + $0x50] sm:$0xff] }
 0x22e   : > { %2391 = vst.msk [vmem:[#allocation3 + $0x40] sm:$0xff] %vm681_vm0, %v4498_v18 }
 0x231   : > { %v3245_v1 = vld [vmem:[#allocation2 + $0x78] sm:$0xff] }
 0x232   : > { %v1209_v0 = vpop.xlane.xlu0 %1208  ;;  %1137 = vmatmul.bf16.gmra.mxu2 %v3245_v1  ;;  %1048 = vmatmul.bf16.gmra.mxu1 %v3245_v1 }
 0x233   : > { %v4514_v57 = vmax.f32 %v4509_v19, %v1209_v0  ;;  %v3271_v19 = vld [vmem:[%s4166_s9 + $0x40] sm:$0xff] }
 0x235   : > { %2392 = vst.msk [vmem:[#allocation3 + $0x48] sm:$0xff] %vm681_vm0, %v4514_v57  ;;  %1244 = vmax.xlane.f32.xlu0 %v1243_v12  ;;  %v614_v12 = vpop.f32.mrf.mxu3 }
 0x236   : > { %v615_v55 = vadd.f32 %v4231_v29, %v614_v12  ;;  %v3269_v29 = vld [vmem:[%s4166_s9 + $0x30] sm:$0xff] }
 0x238   : > { %v3358_v21 = vpack.c.bf16 %v615_v55, %v613_v53  ;;  %v3277_v55 = vld [vmem:[%s4166_s9 + $0x70] sm:$0xff] }
 0x23a   : > { %v1212_v0 = vpop.xlane.xlu1 %1211  ;;  %1238 = vmax.xlane.f32.xlu1 %v1237_v61  ;;  %3374 = vst [vmem:[#allocation2 + $0x28] sm:$0xff] %v3358_v21   ;;  %v3270_v61 = vld [vmem:[%s4166_s9 + $0x38] sm:$0xff]  ;;  %v4544_v21 = vld [vmem:[#allocation3 + $0x60] sm:$0xff] }
 0x23b   : > { %v4526_v35 = vmax.f32 %v4520_v26, %v1212_v0  ;;  %v3278_v0 = vld [vmem:[%s4166_s9 + $0x78] sm:$0xff]  ;;  %2140 = vmatpush.bf16.msrb.mxu3 %v3270_v61  ;;  %5424 = vst [vmem:[#allocation53_spill] sm:$0xff] %v4544_v21  ;;  %v3268_v61 = vld [vmem:[%s4166_s9 + $0x28] sm:$0xff] }
 0x23c   : > { %2229 = vmatpush.bf16.msrb.mxu0 %v3278_v0  ;;  %v3276_v0 = vld [vmem:[%s4166_s9 + $0x68] sm:$0xff] }
 0x23d   : > { %2393 = vst.msk [vmem:[#allocation3 + $0x50] sm:$0xff] %vm681_vm0, %v4526_v35 }
 0x23f   : > { %2141 = vmatpush.bf16.msrb.mxu3 %v3269_v29  ;;  %v3275_v29 = vld [vmem:[%s4166_s9 + $0x60] sm:$0xff] }
 0x240   : > { %1421 = vperm.xlu2 %3491, %v4434_v24   ;;  %2230 = vmatpush.bf16.msrb.mxu0 %v3277_v55 }
 0x241   : > { %v3246_v53 = vld [vmem:[#allocation2 + $0x28] sm:$0xff] }
 0x242   : > { %v1215_v1 = vpop.xlane.xlu2 %1214  ;;  %1142 = vmatmul.bf16.gmra.mxu2 %v3246_v53  ;;  %1053 = vmatmul.bf16.gmra.mxu1 %v3246_v53  ;;  %v3266_v53 = vld [vmem:[%s4166_s9 + $0x18] sm:$0xff] }
 0x243   : > { %v4535_v28 = vmax.f32 %v4532_v22, %v1215_v1  ;;  %2142 = vmatpush.bf16.msrb.mxu3 %v3268_v61  ;;  %v4556_v22 = vld [vmem:[#allocation3 + $0x68] sm:$0xff]  ;;  %v3265_v61 = vld [vmem:[%s4166_s9 + $0x10] sm:$0xff] }
 0x244   : > { %2231 = vmatpush.bf16.msrb.mxu0 %v3276_v0  ;;  %5425 = vst [vmem:[#allocation54_spill] sm:$0xff] %v4556_v22  ;;  %v4568_v0 = vld [vmem:[#allocation3 + $0x70] sm:$0xff] }
 0x245   : > { %2394 = vst.msk [vmem:[#allocation3 + $0x58] sm:$0xff] %vm681_vm0, %v4535_v28 }
 0x246   : > { %5426 = vst [vmem:[#allocation55_spill] sm:$0xff] %v4568_v0 }
 0x247   : > { %2143 = vmatpush.bf16.msrb.mxu3 %v3267_v7  ;;  %v3273_v7 = vld [vmem:[%s4166_s9 + $0x50] sm:$0xff] }
 0x248   : > { %1426 = vperm.xlu2 %3491, %v4448_v39   ;;  %2232 = vmatpush.bf16.msrb.mxu0 %v3275_v29  ;;  %v4570_v29 = vpop.f32.mrf.mxu1 }
 0x249   : > { %1446 = vperm.xlu0 %3492, %v4498_v18   ;;  %v3274_v18 = vld [vmem:[%s4166_s9 + $0x58] sm:$0xff]  ;;  %5427 = vst [vmem:[#allocation56_spill] sm:$0xff] %v4570_v29 }
 0x24a   : > { %v1218_v12 = vpop.xlane.xlu0 %1217 }
 0x24b   : > { %v4548_v1 = vmax.f32 %v4544_v21, %v1218_v12  ;;  %2144 = vmatpush.bf16.msrb.mxu3 %v3266_v53  ;;  %v3264_v53 = vld [vmem:[%s4166_s9 + $0x8] sm:$0xff] }
 0x24c   : > { %2233 = vmatpush.bf16.msrb.mxu0 %v3274_v18  ;;  %v3272_v21 = vld [vmem:[%s4166_s9 + $0x48] sm:$0xff]  ;;  %v3263_v18 = vld [vmem:[%s4166_s9] sm:$0xff] }
 0x24d   : > { %2395 = vst.msk [vmem:[#allocation3 + $0x60] sm:$0xff] %vm681_vm0, %v4548_v1 }
 0x24f   : > { %2145 = vmatpush.bf16.msrb.mxu3 %v3265_v61 }
 0x250   : > { %2234 = vmatpush.bf16.msrb.mxu0 %v3273_v7 }
 0x252   : > { %v1221_v55 = vpop.xlane.xlu1 %1220 }
 0x253   : > { %v4559_v12 = vmax.f32 %v4556_v22, %v1221_v55  ;;  %1431 = vperm.xlu1 %3493, %v4460_v3   ;;  %v4572_v55 = vpop.f32.mrf.mxu2  ;;  %2146 = vmatpush.bf16.msrb.mxu3 %v3264_v53 }
 0x254   : > { %5428 = vst [vmem:[#allocation57_spill] sm:$0xff] %v4572_v55  ;;  %2235 = vmatpush.bf16.msrb.mxu0 %v3272_v21 }
 0x255   : > { %2396 = vst.msk [vmem:[#allocation3 + $0x68] sm:$0xff] %vm681_vm0, %v4559_v12 }
 0x257   : > { %2147 = vmatpush.bf16.msrb.mxu3 %v3263_v18 }
 0x258   : > { %2236 = vmatpush.bf16.msrb.mxu0 %v3271_v19 }
 0x25a   : > { %v1224_v6 = vpop.xlane.xlu2 %1223 }
 0x25b   : > { %v4575_v3 = vmax.f32 %v4568_v0, %v1224_v6  ;;  %1441 = vperm.xlu1 %3493, %v4482_v8   ;;  %v4589_v6 = vpop.f32.mrf.mxu1  ;;  %v4591_v0 = vpop.f32.mrf.mxu2 }
 0x25c   : > { %5430 = vst [vmem:[#allocation59_spill] sm:$0xff] %v4589_v6 }
 0x25d   : > { %2397 = vst.msk [vmem:[#allocation3 + $0x70] sm:$0xff] %vm681_vm0, %v4575_v3 }
 0x25e   : > { %5431 = vst [vmem:[#allocation60_spill] sm:$0xff] %v4591_v0 }
 0x262   : > { %v1227_v61 = vpop.xlane.xlu0 %1226  ;;  %v1407_v19 = vpop.permute.xlu2 %1406 }
 0x263   : > { %v4587_v7 = vmax.f32 %v4584_v10, %v1227_v61  ;;  %v4600_v43 = vpop.f32.mrf.mxu1  ;;  %v4602_v18 = vpop.f32.mrf.mxu2  ;;  %v1240_v61 = vmax.f32 %v4492_v46, %v4488_v14  ;;  %v1564_v24 = vsub.f32 %v4261_v40, %v1407_v19  ;;  %v1565_v20 = vsub.f32 %v4263_v42, %v1407_v19 }
 0x264   : > { %5433 = vst [vmem:[#allocation62_spill] sm:$0xff] %v4600_v43  ;;  %v1252_v10 = vmax.f32 %v4600_v43, %v4602_v18 }
 0x265   : > { %2398 = vst.msk [vmem:[#allocation3 + $0x78] sm:$0xff] %vm681_vm0, %v4587_v7  ;;  %v1630_v38 = vmul.f32 1.442695, %v1565_v20  ;;  %v1246_v20 = vmax.f32 %v4570_v29, %v4572_v55 }
 0x266   : > { %5434 = vst [vmem:[#allocation63_spill] sm:$0xff] %v4602_v18 }
 0x26a   : > { %v1230_v53 = vpop.xlane.xlu1 %1229 }
 0x26b   : > { %v4598_v21 = vmax.f32 %v4595_v50, %v1230_v53  ;;  %v1628_v53 = vmul.f32 1.442695, %v1564_v24 }
 0x26d   : > { %2399 = vst.msk [vmem:[#allocation3 + $0x80] sm:$0xff] %vm681_vm0, %v4598_v21  ;;  %3498 = vpow2.f32 %v1628_v53 }
 0x26e   : > { %3500 = vpow2.f32 %v1630_v38 }
 0x271   : > { %1241 = vmax.xlane.f32.xlu2 %v1240_v61 }
 0x273   : > { %1253 = vmax.xlane.f32.xlu0 %v1252_v10  ;;  %v3499_v18 = vpop.eup %3498 }
 0x274   : > { %v3501_v43 = vpop.eup %3500 }
 0x275   : > { %v1412_v37 = vpop.permute.xlu0 %1411 }
 0x276   : > { %v1566_v48 = vsub.f32 %v4267_v44, %v1412_v37  ;;  %v1567_v41 = vsub.f32 %v4269_v45, %v1412_v37  ;;  %v4618_v44 = vpop.f32.mrf.mxu1  ;;  %v4620_v45 = vpop.f32.mrf.mxu2  ;;  %v4622_v37 = vld [vmem:[#allocation3 + $0x88] sm:$0xff] }
 0x277   : > { %5435 = vst [vmem:[#allocation64_spill] sm:$0xff] %v4618_v44 }
 0x278   : > { %v1632_v50 = vmul.f32 1.442695, %v1566_v48  ;;  %v1634_v22 = vmul.f32 1.442695, %v1567_v41  ;;  %5436 = vst [vmem:[#allocation65_spill] sm:$0xff] %v4620_v45 }
 0x27a   : > { %3502 = vpow2.f32 %v1632_v50  ;;  %v4631_v50 = vld [vmem:[#allocation3 + $0x90] sm:$0xff] }
 0x27b   : > { %3504 = vpow2.f32 %v1634_v22 }
 0x27e   : > { %v4634_v10 = vpop.f32.mrf.mxu1 }
 0x280   : > { %v3503_v40 = vpop.eup %3502 }
 0x281   : > { %v3505_v14 = vpop.eup %3504  ;;  %v1756_v42 = vpack.c.bf16 %v3503_v40, %v3499_v18 }
 0x282   : > { %v1757_v19 = vpack.c.bf16 %v3505_v14, %v3501_v43  ;;  %v1417_v38 = vpop.permute.xlu1 %1416  ;;  %v4636_v14 = vpop.f32.mrf.mxu2 }
 0x283   : > { %2148 = vmatmul.bf16.vlgmr.msrb.gmra.mxu3 %v1756_v42  ;;  %v1568_v48 = vsub.f32 %v4273_v47, %v1417_v38  ;;  %v1569_v24 = vsub.f32 %v4275_v49, %v1417_v38  ;;  %5437 = vst [vmem:[#allocation66_spill] sm:$0xff] %v4636_v14 }
 0x284   : > { %2237 = vmatmul.bf16.vlgmr.msrb.gmra.mxu0 %v1757_v19 }
 0x285   : > { %1247 = vmax.xlane.f32.xlu1 %v1246_v20  ;;  %v1636_v61 = vmul.f32 1.442695, %v1568_v48  ;;  %v1638_v53 = vmul.f32 1.442695, %v1569_v24  ;;  %v4645_v20 = vld [vmem:[#allocation3 + $0xa8] sm:$0xff] }
 0x286   : > { %v4650_v48 = vpop.f32.mrf.mxu1 }
 0x287   : > { %1461 = vperm.xlu0 %3492, %v4535_v28   ;;  %3506 = vpow2.f32 %v1636_v61  ;;  %5438 = vst [vmem:[#allocation67_spill] sm:$0xff] %v4650_v48 }
 0x288   : > { %3508 = vpow2.f32 %v1638_v53 }
 0x289   : > { %1436 = vperm.xlu2 %3491, %v4471_v16  }
 0x28a   : > { %v4652_v24 = vpop.f32.mrf.mxu2 }
 0x28b   : > { %5439 = vst [vmem:[#allocation68_spill] sm:$0xff] %v4652_v24  ;;  %v1261_v53 = vmax.f32 %v4650_v48, %v4652_v24 }
 0x29b   : > { %v1233_v41 = vpop.xlane.xlu2 %1232 }
 0x29c   : > { %v4625_v43 = vmax.f32 %v4622_v37, %v1233_v41 }
 0x29e   : > { %2400 = vst.msk [vmem:[#allocation3 + $0x88] sm:$0xff] %vm681_vm0, %v4625_v43  ;;  %1456 = vperm.xlu1 %3493, %v4526_v35  }
 0x2a0   : > { %v1236_v22 = vpop.xlane.xlu0 %1235 }
 0x2a1   : > { %v4639_v18 = vmax.f32 %v4631_v50, %v1236_v22 }
 0x2a3   : > { %2401 = vst.msk [vmem:[#allocation3 + $0x90] sm:$0xff] %vm681_vm0, %v4639_v18  ;;  %v1422_v47 = vpop.permute.xlu2 %1421 }
 0x2a4   : > { %v1570_v40 = vsub.f32 %v4279_v51, %v1422_v47  ;;  %v1571_v42 = vsub.f32 %v4281_v52, %v1422_v47  ;;  %v4656_v51 = vld [vmem:[#allocation3 + $0x98] sm:$0xff]  ;;  %v3507_v52 = vpop.eup %3506 }
 0x2a5   : > { %v3509_v22 = vpop.eup %3508 }
 0x2a6   : > { %v1640_v49 = vmul.f32 1.442695, %v1570_v40  ;;  %v1642_v19 = vmul.f32 1.442695, %v1571_v42 }
 0x2a8   : > { %3510 = vpow2.f32 %v1640_v49  ;;  %v1245_v38 = vpop.xlane.xlu0 %1244 }
 0x2a9   : > { %3512 = vpow2.f32 %v1642_v19  ;;  %v4648_v41 = vmax.f32 %v4645_v20, %v1245_v38  ;;  %v1249_v38 = vmax.f32 %v4589_v6, %v4591_v0 }
 0x2ab   : > { %2404 = vst.msk [vmem:[#allocation3 + $0xa8] sm:$0xff] %vm681_vm0, %v4648_v41  ;;  %v1427_v55 = vpop.permute.xlu2 %1426 }
 0x2ac   : > { %v1572_v24 = vsub.f32 %v4285_v54, %v1427_v55  ;;  %v1573_v48 = vsub.f32 %v4287_v56, %v1427_v55 }
 0x2ad   : > { %v1239_v61 = vpop.xlane.xlu1 %1238 }
 0x2ae   : > { %v3511_v47 = vpop.eup %3510  ;;  %v4661_v40 = vmax.f32 %v4656_v51, %v1239_v61  ;;  %v1644_v61 = vmul.f32 1.442695, %v1572_v24  ;;  %v1646_v29 = vmul.f32 1.442695, %v1573_v48 }
 0x2af   : > { %v3513_v42 = vpop.eup %3512  ;;  %v1758_v49 = vpack.c.bf16 %v3511_v47, %v3507_v52  ;;  %v1255_v47 = vmax.f32 %v4618_v44, %v4620_v45 }
 0x2b0   : > { %2402 = vst.msk [vmem:[#allocation3 + $0x98] sm:$0xff] %vm681_vm0, %v4661_v40  ;;  %v1759_v19 = vpack.c.bf16 %v3513_v42, %v3509_v22  ;;  %3514 = vpow2.f32 %v1644_v61 }
 0x2b1   : > { %2153 = vmatmul.bf16.gmra.mxu3 %v1758_v49  ;;  %1262 = vmax.xlane.f32.xlu0 %v1261_v53  ;;  %3516 = vpow2.f32 %v1646_v29 }
 0x2b2   : > { %2242 = vmatmul.bf16.gmra.mxu0 %v1759_v19  ;;  %1250 = vmax.xlane.f32.xlu2 %v1249_v38  ;;  %v4686_v38 = vld [vmem:[#allocation3 + $0xa0] sm:$0xff] }
 0x2b6   : > { %v3515_v54 = vpop.eup %3514 }
 0x2b7   : > { %v3517_v56 = vpop.eup %3516 }
 0x2bb   : > { %v4679_v49 = vpop.permute.xlu0 %1446 }
 0x2c5   : > { %v1432_v46 = vpop.permute.xlu1 %1431  ;;  %1476 = vperm.xlu0 %3492, %v4575_v3  }
 0x2c6   : > { %v1574_v52 = vsub.f32 %v4291_v58, %v1432_v46  ;;  %v1575_v22 = vsub.f32 %v4293_v59, %v1432_v46  ;;  %v4675_v59 = vpop.f32.mrf.mxu1  ;;  %v4677_v46 = vpop.f32.mrf.mxu2 }
 0x2c7   : > { %5440 = vst [vmem:[#allocation69_spill] sm:$0xff] %v4675_v59 }
 0x2c8   : > { %v1648_v53 = vmul.f32 1.442695, %v1574_v52  ;;  %v1650_v42 = vmul.f32 1.442695, %v1575_v22  ;;  %1256 = vmax.xlane.f32.xlu1 %v1255_v47  ;;  %5441 = vst [vmem:[#allocation70_spill] sm:$0xff] %v4677_v46  ;;  %v4688_v22 = vld [vmem:[#allocation3 + $0xc0] sm:$0xff] }
 0x2ca   : > { %3518 = vpow2.f32 %v1648_v53  ;;  %1451 = vperm.xlu2 %3491, %v4514_v57  }
 0x2cb   : > { %3520 = vpow2.f32 %v1650_v42 }
 0x2cd   : > { %v1442_v61 = vpop.permute.xlu1 %1441 }
 0x2ce   : > { %v4681_v19 = vpop.f32.mrf.mxu2  ;;  %v4683_v29 = vpop.f32.mrf.mxu1  ;;  %v1578_v42 = vsub.f32 %v4305_v4, %v1442_v61 }
 0x2cf   : > { %5442 = vst [vmem:[#allocation71_spill] sm:$0xff] %v4681_v19 }
 0x2d0   : > { %v3519_v55 = vpop.eup %3518  ;;  %5443 = vst [vmem:[#allocation72_spill] sm:$0xff] %v4683_v29 }
 0x2d1   : > { %v3521_v48 = vpop.eup %3520  ;;  %v1760_v24 = vpack.c.bf16 %v3519_v55, %v3515_v54  ;;  %v1579_v55 = vsub.f32 %v4307_v5, %v1442_v61  ;;  %v1258_v61 = vmax.f32 %v4634_v10, %v4636_v14 }
 0x2d2   : > { %v1761_v58 = vpack.c.bf16 %v3521_v48, %v3517_v56 }
 0x2d3   : > { %2158 = vmatmul.bf16.gmra.mxu3 %v1760_v24 }
 0x2d4   : > { %2247 = vmatmul.bf16.gmra.mxu0 %v1761_v58  ;;  %v1656_v58 = vmul.f32 1.442695, %v1578_v42 }
 0x2d6   : > { %v4702_v48 = vpop.f32.mrf.mxu2  ;;  %v4704_v24 = vpop.f32.mrf.mxu1  ;;  %3522 = vpow2.f32 %v1656_v58 }
 0x2d7   : > { %5444 = vst [vmem:[#allocation73_spill] sm:$0xff] %v4702_v48  ;;  %v1270_v4 = vmax.f32 %v4704_v24, %v4702_v48  ;;  %v4714_v48 = vld [vmem:[#allocation3 + $0xb0] sm:$0xff] }
 0x2d8   : > { %5445 = vst [vmem:[#allocation74_spill] sm:$0xff] %v4704_v24 }
 0x2dc   : > { %v3523_v42 = vpop.eup %3522 }
 0x2e1   : > { %1471 = vperm.xlu1 %3493, %v4559_v12  }
 0x2e4   : > { %v1242_v52 = vpop.xlane.xlu2 %1241 }
 0x2e5   : > { %v4691_v47 = vmax.f32 %v4686_v38, %v1242_v52  ;;  %v1658_v52 = vmul.f32 1.442695, %v1579_v55 }
 0x2e6   : > { %v1254_v53 = vpop.xlane.xlu0 %1253 }
 0x2e7   : > { %2403 = vst.msk [vmem:[#allocation3 + $0xa0] sm:$0xff] %vm681_vm0, %v4691_v47  ;;  %v4699_v56 = vmax.f32 %v4688_v22, %v1254_v53  ;;  %3524 = vpow2.f32 %v1658_v52 }
 0x2e9   : > { %2407 = vst.msk [vmem:[#allocation3 + $0xc0] sm:$0xff] %vm681_vm0, %v4699_v56 }
 0x2ec   : > { %v1437_v54 = vpop.permute.xlu2 %1436 }
 0x2ed   : > { %v1576_v45 = vsub.f32 %v4299_v63, %v1437_v54  ;;  %v1577_v53 = vsub.f32 %v4301_v2, %v1437_v54  ;;  %v3525_v0 = vpop.eup %3524 }
 0x2ef   : > { %v1652_v44 = vmul.f32 1.442695, %v1576_v45  ;;  %v1654_v5 = vmul.f32 1.442695, %v1577_v53  ;;  %1271 = vmax.xlane.f32.xlu0 %v1270_v4  ;;  %v1264_v4 = vmax.f32 %v4675_v59, %v4677_v46 }
 0x2f1   : > { %3526 = vpow2.f32 %v1652_v44 }
 0x2f2   : > { %3528 = vpow2.f32 %v1654_v5 }
 0x2f3   : > { %1259 = vmax.xlane.f32.xlu2 %v1258_v61 }
 0x2f7   : > { %v3527_v55 = vpop.eup %3526 }
 0x2f8   : > { %v3529_v24 = vpop.eup %3528  ;;  %v1248_v63 = vpop.xlane.xlu1 %1247  ;;  %v1762_v6 = vpack.c.bf16 %v3523_v42, %v3527_v55  ;;  %v1580_v42 = vsub.f32 %v4313_v9, %v4679_v49 }
 0x2f9   : > { %v4717_v2 = vmax.f32 %v4714_v48, %v1248_v63  ;;  %v1763_v45 = vpack.c.bf16 %v3525_v0, %v3529_v24  ;;  %v1462_v0 = vpop.permute.xlu0 %1461  ;;  %v4730_v24 = vld [vmem:[#allocation3 + $0xb8] sm:$0xff]  ;;  %v1581_v63 = vsub.f32 %v4315_v11, %v4679_v49  ;;  %v1267_v11 = vmax.f32 %v4683_v29, %v4681_v19 }
 0x2fa   : > { %2163 = vmatmul.bf16.gmra.mxu3 %v1762_v6  ;;  %v4728_v6 = vld [vmem:[#allocation3 + $0xd8] sm:$0xff] }
 0x2fb   : > { %2405 = vst.msk [vmem:[#allocation3 + $0xb0] sm:$0xff] %vm681_vm0, %v4717_v2  ;;  %2252 = vmatmul.bf16.gmra.mxu0 %v1763_v45 }
 0x301   : > { %v2238_v44 = vpop.f32.mrf.mxu0 }
 0x303   : > { %1491 = vperm.xlu0 %3492, %v4625_v43  }
 0x306   : > { %v2149_v54 = vpop.f32.mrf.mxu3 }
 0x307   : > { %v4722_v58 = vadd.f32 %v2238_v44, %v2149_v54  ;;  %v1660_v44 = vmul.f32 1.442695, %v1580_v42 }
 0x309   : > { %5446 = vst [vmem:[#allocation75_spill] sm:$0xff] %v4722_v58  ;;  %v4750_v45 = vpop.f32.mrf.mxu0  ;;  %3530 = vpow2.f32 %v1660_v44 }
 0x30b   : > { %1466 = vperm.xlu2 %3491, %v4548_v1   ;;  %1265 = vmax.xlane.f32.xlu1 %v1264_v4  ;;  %v1662_v4 = vmul.f32 1.442695, %v1581_v63 }
 0x30c   : > { %1506 = vperm.xlu0 %3492, %v4691_v47  }
 0x30d   : > { %3532 = vpow2.f32 %v1662_v4 }
 0x30e   : > { %v4752_v54 = vpop.f32.mrf.mxu3 }
 0x30f   : > { %v3531_v63 = vpop.eup %3530 }
 0x310   : > { %v1457_v49 = vpop.permute.xlu1 %1456 }
 0x313   : > { %v3533_v14 = vpop.eup %3532 }
 0x324   : > { %1486 = vperm.xlu1 %3493, %v4598_v21   ;;  %v1263_v52 = vpop.xlane.xlu0 %1262 }
 0x325   : > { %v1251_v53 = vpop.xlane.xlu2 %1250  ;;  %v4734_v5 = vmax.f32 %v4728_v6, %v1263_v52 }
 0x326   : > { %v4737_v61 = vmax.f32 %v4730_v24, %v1251_v53 }
 0x327   : > { %2410 = vst.msk [vmem:[#allocation3 + $0xd8] sm:$0xff] %vm681_vm0, %v4734_v5 }
 0x328   : > { %2406 = vst.msk [vmem:[#allocation3 + $0xb8] sm:$0xff] %vm681_vm0, %v4737_v61  ;;  %1521 = vperm.xlu0 %3492, %v4737_v61  }
 0x32d   : > { %v1452_v52 = vpop.permute.xlu2 %1451 }
 0x32e   : > { %v1582_v9 = vsub.f32 %v4319_v13, %v1452_v52  ;;  %v1583_v53 = vsub.f32 %v4321_v15, %v1452_v52  ;;  %v1584_v15 = vsub.f32 %v4325_v17, %v1457_v49  ;;  %v1585_v52 = vsub.f32 %v4330_v23, %v1457_v49 }
 0x32f   : > { %v2243_v46 = vpop.f32.mrf.mxu0 }
 0x330   : > { %v1664_v55 = vmul.f32 1.442695, %v1582_v9  ;;  %v1666_v58 = vmul.f32 1.442695, %v1583_v53  ;;  %v1586_v9 = vsub.f32 %v4335_v25, %v1462_v0  ;;  %v1670_v19 = vmul.f32 1.442695, %v1585_v52 }
 0x332   : > { %3534 = vpow2.f32 %v1664_v55  ;;  %v4762_v55 = vld [vmem:[#allocation3 + $0xc8] sm:$0xff]  ;;  %v1672_v23 = vmul.f32 1.442695, %v1586_v9 }
 0x333   : > { %3536 = vpow2.f32 %v1666_v58  ;;  %v1587_v58 = vsub.f32 %v4343_v27, %v1462_v0 }
 0x334   : > { %v2154_v42 = vpop.f32.mrf.mxu3  ;;  %1268 = vmax.xlane.f32.xlu2 %v1267_v11 }
 0x335   : > { %v4758_v59 = vadd.f32 %v2243_v46, %v2154_v42  ;;  %v1668_v46 = vmul.f32 1.442695, %v1584_v15  ;;  %v1674_v25 = vmul.f32 1.442695, %v1587_v58  ;;  %v4777_v15 = vpop.f32.mrf.mxu2 }
 0x337   : > { %5447 = vst [vmem:[#allocation76_spill] sm:$0xff] %v4758_v59  ;;  %v2245_v42 = vpop.f32.mrf.mxu0  ;;  %3538 = vpow2.f32 %v1668_v46  ;;  %v4785_v58 = vpop.permute.xlu0 %1476 }
 0x338   : > { %v3535_v13 = vpop.eup %3534  ;;  %3540 = vpow2.f32 %v1670_v19 }
 0x339   : > { %v3537_v44 = vpop.eup %3536  ;;  %v1764_v4 = vpack.c.bf16 %v3535_v13, %v3531_v63  ;;  %3542 = vpow2.f32 %v1672_v23  ;;  %v4775_v13 = vpop.f32.mrf.mxu1 }
 0x33a   : > { %v1765_v53 = vpack.c.bf16 %v3537_v44, %v3533_v14  ;;  %3544 = vpow2.f32 %v1674_v25 }
 0x33b   : > { %2168 = vmatmul.bf16.gmra.mxu3 %v1764_v4  ;;  %v1257_v11 = vpop.xlane.xlu1 %1256  ;;  %v1273_v4 = vmax.f32 %v4775_v13, %v4777_v15 }
 0x33c   : > { %2257 = vmatmul.bf16.gmra.mxu0 %v1765_v53  ;;  %v4767_v59 = vmax.f32 %v4762_v55, %v1257_v11  ;;  %v2156_v17 = vpop.f32.mrf.mxu3  ;;  %v4788_v11 = vld [vmem:[#allocation3 + $0xf0] sm:$0xff] }
 0x33d   : > { %v4769_v29 = vadd.f32 %v2245_v42, %v2156_v17  ;;  %v3539_v27 = vpop.eup %3538  ;;  %v4794_v17 = vld [vmem:[#allocation3 + $0xd0] sm:$0xff] }
 0x33e   : > { %v1333_v49 = vsub.f32 %v4762_v55, %v4767_v59  ;;  %2408 = vst.msk [vmem:[#allocation3 + $0xc8] sm:$0xff] %vm681_vm0, %v4767_v59  ;;  %v3541_v14 = vpop.eup %3540 }
 0x33f   : > { %v3543_v0 = vpop.eup %3542 }
 0x340   : > { %v3545_v63 = vpop.eup %3544  ;;  %v1766_v44 = vpack.c.bf16 %v3543_v0, %v3539_v27 }
 0x341   : > { %v1767_v52 = vpack.c.bf16 %v3545_v63, %v3541_v14 }
 0x34b   : > { %2173 = vmatmul.bf16.gmra.mxu3 %v1766_v44 }
 0x34c   : > { %2262 = vmatmul.bf16.gmra.mxu0 %v1767_v52  ;;  %1481 = vperm.xlu2 %3491, %v4587_v7  }
 0x34e   : > { %1274 = vmax.xlane.f32.xlu1 %v1273_v4 }
 0x351   : > { %v2248_v19 = vpop.f32.mrf.mxu0 }
 0x353   : > { %v1472_v25 = vpop.permute.xlu1 %1471 }
 0x354   : > { %1496 = vperm.xlu2 %3491, %v4639_v18   ;;  %v1590_v0 = vsub.f32 %v4363_v33, %v1472_v25  ;;  %v1591_v44 = vsub.f32 %v4371_v34, %v1472_v25  ;;  %v5448_v33 = vsub.f32 %v4404_v60, %v4407_v62  ;;  %v5449_v60 = vsub.f32 %v4443_v32, %v4448_v39 }
 0x355   : > { %v5450_v32 = vsub.f32 %v4479_v36, %v4482_v8  ;;  %v5451_v8 = vld [vmem:[#allocation54_spill] sm:$0xff] }
 0x356   : > { %v2159_v9 = vpop.f32.mrf.mxu3  ;;  %v1680_v52 = vmul.f32 1.442695, %v1590_v0  ;;  %v1682_v4 = vmul.f32 1.442695, %v1591_v44  ;;  %v1348_v62 = vmul.f32 1.442695, %v5449_v60  ;;  %v1321_v36 = vsub.f32 %v5451_v8, %v4559_v12 }
 0x357   : > { %v4783_v53 = vadd.f32 %v2248_v19, %v2159_v9  ;;  %v1354_v39 = vmul.f32 1.442695, %v5450_v32  ;;  %v1330_v12 = vsub.f32 %v4714_v48, %v4717_v2 }
 0x358   : > { %3546 = vpow2.f32 %v1680_v52 }
 0x359   : > { %3548 = vpow2.f32 %v1682_v4  ;;  %v4818_v34 = vpop.f32.mrf.mxu0 }
 0x35c   : > { %1511 = vperm.xlu2 %3491, %v4648_v41  }
 0x362   : > { %v1272_v46 = vpop.xlane.xlu0 %1271 }
 0x363   : > { %v4791_v42 = vmax.f32 %v4788_v11, %v1272_v46 }
 0x364   : > { %1526 = vperm.xlu2 %3491, %v4699_v56  }
 0x365   : > { %2413 = vst.msk [vmem:[#allocation3 + $0xf0] sm:$0xff] %vm681_vm0, %v4791_v42 }
 0x366   : > { %v1260_v27 = vpop.xlane.xlu2 %1259 }
 0x367   : > { %v4801_v14 = vmax.f32 %v4794_v17, %v1260_v27  ;;  %1501 = vperm.xlu1 %3493, %v4661_v40   ;;  %v1342_v27 = vmul.f32 1.442695, %v5448_v33 }
 0x369   : > { %2409 = vst.msk [vmem:[#allocation3 + $0xd0] sm:$0xff] %vm681_vm0, %v4801_v14  ;;  %1536 = vperm.xlu0 %3492, %v4801_v14  }
 0x36c   : > { %1541 = vperm.xlu2 %3491, %v4734_v5  }
 0x36e   : > { %v1467_v19 = vpop.permute.xlu2 %1466 }
 0x36f   : > { %v1588_v9 = vsub.f32 %v4349_v30, %v1467_v19  ;;  %v1589_v46 = vsub.f32 %v4357_v31, %v1467_v19  ;;  %1516 = vperm.xlu1 %3493, %v4717_v2   ;;  %v4821_v30 = vpop.f32.mrf.mxu3  ;;  %v3547_v31 = vpop.eup %3546 }
 0x370   : > { %v3549_v25 = vpop.eup %3548 }
 0x371   : > { %v1676_v63 = vmul.f32 1.442695, %v1588_v9  ;;  %v1678_v23 = vmul.f32 1.442695, %v1589_v46 }
 0x373   : > { %3550 = vpow2.f32 %v1676_v63  ;;  %v4829_v63 = vld [vmem:[#allocation3 + $0xe0] sm:$0xff] }
 0x374   : > { %3552 = vpow2.f32 %v1678_v23  ;;  %1556 = vperm.xlu2 %3491, %v4791_v42  }
 0x375   : > { %3554 = vpow2.f32 %v1342_v27 }
 0x376   : > { %3556 = vpow2.f32 %v1348_v62 }
 0x377   : > { %1531 = vperm.xlu1 %3493, %v4767_v59   ;;  %3558 = vpow2.f32 %v1354_v39 }
 0x378   : > { %v4827_v19 = vpop.f32.mrf.mxu0 }
 0x379   : > { %v3551_v0 = vpop.eup %3550 }
 0x37a   : > { %v3553_v44 = vpop.eup %3552  ;;  %v1768_v52 = vpack.c.bf16 %v3547_v31, %v3551_v0  ;;  %v1318_v31 = vsub.f32 %v4520_v26, %v4526_v35  ;;  %v1327_v26 = vsub.f32 %v4656_v51, %v4661_v40  ;;  %v5456_v51 = vld [vmem:[#allocation24_spill] sm:$0xff] }
 0x37b   : > { %v3555_v4 = vpop.eup %3554  ;;  %v1769_v23 = vpack.c.bf16 %v3549_v25, %v3553_v44  ;;  %v1592_v40 = vsub.f32 %v5456_v51, %v4785_v58 }
 0x37c   : > { %2178 = vmatmul.bf16.gmra.mxu3 %v1768_v52  ;;  %1827 = vperm.xlu2 %3491, %v3555_v4   ;;  %v3557_v27 = vpop.eup %3556  ;;  %v1360_v62 = vmul.f32 1.442695, %v1318_v31  ;;  %v1366_v52 = vmul.f32 1.442695, %v1321_v36  ;;  %v1378_v39 = vmul.f32 1.442695, %v1327_v26 }
 0x37d   : > { %2267 = vmatmul.bf16.gmra.mxu0 %v1769_v23  ;;  %v4831_v9 = vpop.f32.mrf.mxu3  ;;  %v3559_v44 = vpop.eup %3558  ;;  %v5452_v23 = vld [vmem:[#allocation61_spill] sm:$0xff]  ;;  %v1384_v36 = vmul.f32 1.442695, %v1330_v12  ;;  %v1684_v26 = vmul.f32 1.442695, %v1592_v40  ;;  %v5461_v12 = vld [vmem:[#allocation27_spill] sm:$0xff] }
 0x37e   : > { %v1266_v46 = vpop.xlane.xlu1 %1265  ;;  %3560 = vpow2.f32 %v1360_v62  ;;  %v4854_v31 = vld [vmem:[#allocation3 + $0xe8] sm:$0xff] }
 0x37f   : > { %v4834_v33 = vmax.f32 %v4829_v63, %v1266_v46  ;;  %3562 = vpow2.f32 %v1366_v52  ;;  %v1324_v46 = vsub.f32 %v5452_v23, %v4598_v21  ;;  %v5457_v52 = vld [vmem:[#allocation25_spill] sm:$0xff]  ;;  %v5458_v23 = vld [vmem:[#allocation34_spill] sm:$0xff] }
 0x380   : > { %v2255_v25 = vpop.f32.mrf.mxu0 }
 0x381   : > { %2411 = vst.msk [vmem:[#allocation3 + $0xe0] sm:$0xff] %vm681_vm0, %v4834_v33  ;;  %1546 = vperm.xlu1 %3493, %v4834_v33   ;;  %v1372_v32 = vmul.f32 1.442695, %v1324_v46  ;;  %v5459_v46 = vld [vmem:[#allocation35_spill] sm:$0xff]  ;;  %v1336_v59 = vsub.f32 %v4829_v63, %v4834_v33 }
 0x383   : > { %3564 = vpow2.f32 %v1372_v32  ;;  %v5460_v32 = vsub.f32 %v5458_v23, %v5459_v46 }
 0x384   : > { %1842 = vperm.xlu2 %3491, %v3557_v27   ;;  %v3561_v4 = vpop.eup %3560  ;;  %3566 = vpow2.f32 %v1378_v39 }
 0x385   : > { %v2166_v0 = vpop.f32.mrf.mxu3  ;;  %v3563_v35 = vpop.eup %3562 }
 0x386   : > { %v4844_v60 = vadd.f32 %v2255_v25, %v2166_v0  ;;  %v5453_v25 = vld [vmem:[#allocation26_spill] sm:$0xff]  ;;  %v5454_v0 = vld [vmem:[#allocation28_spill] sm:$0xff] }
 0x387   : > { %v5455_v62 = vsub.f32 %v5453_v25, %v5454_v0  ;;  %v5462_v0 = vld [vmem:[#allocation29_spill] sm:$0xff] }
 0x389   : > { %v3565_v27 = vpop.eup %3564  ;;  %v1340_v21 = vmul.f32 1.442695, %v5455_v62 }
 0x38a   : > { %v3567_v2 = vpop.eup %3566 }
 0x38b   : > { %3568 = vpow2.f32 %v1340_v21 }
 0x38c   : > { %1857 = vperm.xlu2 %3491, %v3559_v44   ;;  %3570 = vpow2.f32 %v1384_v36  ;;  %v5463_v36 = vld [vmem:[#allocation42_spill] sm:$0xff] }
 0x38d   : > { %v1314_v40 = vsub.f32 %v5463_v36, %v4471_v16  ;;  %v5465_v16 = vld [vmem:[#allocation30_spill] sm:$0xff] }
 0x394   : > { %1872 = vperm.xlu2 %3491, %v3561_v4   ;;  %v1593_v4 = vsub.f32 %v5457_v52, %v4785_v58  ;;  %v1390_v58 = vmul.f32 1.442695, %v1333_v49 }
 0x396   : > { %v1686_v39 = vmul.f32 1.442695, %v1593_v4  ;;  %v1352_v4 = vmul.f32 1.442695, %v1314_v40  ;;  %v5471_v40 = vld [vmem:[#allocation36_spill] sm:$0xff] }
 0x39c   : > { %1887 = vperm.xlu2 %3491, %v3563_v35   ;;  %v1346_v35 = vmul.f32 1.442695, %v5460_v32  ;;  %v5464_v32 = vld [vmem:[#allocation50_spill] sm:$0xff] }
 0x39e   : > { %3572 = vpow2.f32 %v1346_v35  ;;  %v1317_v35 = vsub.f32 %v5464_v32, %v4514_v57 }
 0x39f   : > { %3574 = vpow2.f32 %v1684_v26  ;;  %v1492_v26 = vpop.permute.xlu0 %1491 }
 0x3a0   : > { %3576 = vpow2.f32 %v1686_v39  ;;  %v1396_v39 = vmul.f32 1.442695, %v1336_v59  ;;  %v1358_v57 = vmul.f32 1.442695, %v1317_v35  ;;  %v1599_v59 = vsub.f32 %v5471_v40, %v1492_v26 }
 0x3a1   : > { %3578 = vpow2.f32 %v1390_v58 }
 0x3a4   : > { %1902 = vperm.xlu2 %3491, %v3565_v27  }
 0x3a7   : > { %v1269_v44 = vpop.xlane.xlu2 %1268 }
 0x3a8   : > { %v4860_v8 = vmax.f32 %v4854_v31, %v1269_v44  ;;  %v3569_v44 = vpop.eup %3568 }
 0x3a9   : > { %v3571_v52 = vpop.eup %3570 }
 0x3aa   : > { %v1337_v48 = vsub.f32 %v4854_v31, %v4860_v8  ;;  %2412 = vst.msk [vmem:[#allocation3 + $0xe8] sm:$0xff] %vm681_vm0, %v4860_v8  ;;  %1551 = vperm.xlu0 %3492, %v4860_v8   ;;  %v3573_v55 = vpop.eup %3572 }
 0x3ab   : > { %v3575_v49 = vpop.eup %3574 }
 0x3ac   : > { %1917 = vperm.xlu2 %3491, %v3567_v2   ;;  %v1487_v2 = vpop.permute.xlu1 %1486  ;;  %v3577_v23 = vpop.eup %3576 }
 0x3ad   : > { %v3579_v46 = vpop.eup %3578  ;;  %v1596_v58 = vsub.f32 %v5465_v16, %v1487_v2 }
 0x3af   : > { %v1482_v27 = vpop.permute.xlu2 %1481  ;;  %v1692_v32 = vmul.f32 1.442695, %v1596_v58 }
 0x3b0   : > { %v1594_v25 = vsub.f32 %v5461_v12, %v1482_v27  ;;  %v1595_v62 = vsub.f32 %v5462_v0, %v1482_v27  ;;  %v5467_v0 = vld [vmem:[#allocation32_spill] sm:$0xff] }
 0x3b2   : > { %v1688_v21 = vmul.f32 1.442695, %v1594_v25  ;;  %v1690_v51 = vmul.f32 1.442695, %v1595_v62  ;;  %1822 = vperm.xlu0 %3492, %v3569_v44   ;;  %v5466_v25 = vld [vmem:[#allocation31_spill] sm:$0xff]  ;;  %v5468_v62 = vld [vmem:[#allocation33_spill] sm:$0xff] }
 0x3b3   : > { %v1597_v63 = vsub.f32 %v5466_v25, %v1487_v2  ;;  %v5469_v44 = vsub.f32 %v5467_v0, %v5468_v62 }
 0x3b4   : > { %3580 = vpow2.f32 %v1688_v21  ;;  %1932 = vperm.xlu2 %3491, %v3571_v52  }
 0x3b5   : > { %3582 = vpow2.f32 %v1690_v51  ;;  %v1344_v21 = vmul.f32 1.442695, %v5469_v44  ;;  %v5470_v51 = vld [vmem:[#allocation37_spill] sm:$0xff]  ;;  %v5473_v44 = vld [vmem:[#allocation38_spill] sm:$0xff] }
 0x3b6   : > { %3584 = vpow2.f32 %v1352_v4  ;;  %v1598_v52 = vsub.f32 %v5470_v51, %v1492_v26  ;;  %v1179_v4 = vld [vmem:[#allocation3 + $0xf8] sm:$0xff] }
 0x3b7   : > { %3586 = vpow2.f32 %v1396_v39 }
 0x3b8   : > { %3588 = vpow2.f32 %v1344_v21  ;;  %v1696_v2 = vmul.f32 1.442695, %v1598_v52  ;;  %v5474_v21 = vld [vmem:[#allocation40_spill] sm:$0xff] }
 0x3b9   : > { %3590 = vpow2.f32 %v1358_v57  ;;  %v5475_v51 = vsub.f32 %v5473_v44, %v5474_v21  ;;  %v5476_v57 = vld [vmem:[#allocation58_spill] sm:$0xff] }
 0x3ba   : > { %v3581_v27 = vpop.eup %3580  ;;  %1837 = vperm.xlu0 %3492, %v3573_v55   ;;  %v1694_v55 = vmul.f32 1.442695, %v1597_v63  ;;  %3592 = vpow2.f32 %v1692_v32  ;;  %v1323_v40 = vsub.f32 %v5476_v57, %v4587_v7 }
 0x3bb   : > { %v3583_v12 = vpop.eup %3582  ;;  %v1770_v33 = vpack.c.bf16 %v3581_v27, %v3575_v49  ;;  %v1698_v27 = vmul.f32 1.442695, %v1599_v59 }
 0x3bc   : > { %1947 = vperm.xlu2 %3491, %v3579_v46   ;;  %v1771_v36 = vpack.c.bf16 %v3583_v12, %v3577_v23  ;;  %v3585_v49 = vpop.eup %3584  ;;  %v5472_v23 = vld [vmem:[#allocation53_spill] sm:$0xff]  ;;  %3594 = vpow2.f32 %v1694_v55 }
 0x3bd   : > { %2183 = vmatmul.bf16.gmra.mxu3 %v1770_v33  ;;  %v3587_v46 = vpop.eup %3586  ;;  %v1320_v35 = vsub.f32 %v5472_v23, %v4548_v1  ;;  %3596 = vpow2.f32 %v1696_v2  ;;  %v1497_v33 = vpop.permute.xlu2 %1496  ;;  %v1350_v1 = vmul.f32 1.442695, %v5475_v51  ;;  %v5480_v23 = vld [vmem:[#allocation52_spill] sm:$0xff] }
 0x3be   : > { %2272 = vmatmul.bf16.gmra.mxu0 %v1771_v36  ;;  %3598 = vpow2.f32 %v1698_v27  ;;  %v3589_v39 = vpop.eup %3588  ;;  %v5478_v27 = vld [vmem:[#allocation48_spill] sm:$0xff] }
 0x3bf   : > { %v3591_v12 = vpop.eup %3590  ;;  %v1364_v63 = vmul.f32 1.442695, %v1320_v35  ;;  %v1319_v35 = vsub.f32 %v5480_v23, %v4535_v28  ;;  %v5483_v28 = vld [vmem:[#allocation44_spill] sm:$0xff]  ;;  %v1507_v23 = vpop.permute.xlu0 %1506 }
 0x3c0   : > { %v3593_v0 = vpop.eup %3592 }
 0x3c1   : > { %v1275_v16 = vpop.xlane.xlu1 %1274 }
 0x3c2   : > { %v1307_v25 = vmax.f32 %v1179_v4, %v1275_v16  ;;  %1852 = vperm.xlu0 %3492, %v3585_v49   ;;  %v3595_v62 = vpop.eup %3594  ;;  %v5477_v49 = vld [vmem:[#allocation47_spill] sm:$0xff] }
 0x3c3   : > { %v3597_v52 = vpop.eup %3596  ;;  %v5479_v16 = vsub.f32 %v5477_v49, %v5478_v27 }
 0x3c4   : > { %v1339_v26 = vsub.f32 %v1179_v4, %v1307_v25  ;;  %2414 = vst.msk [vmem:[#allocation3 + $0xf8] sm:$0xff] %vm681_vm0, %v1307_v25  ;;  %1962 = vperm.xlu2 %3491, %v3587_v46   ;;  %1561 = vperm.xlu1 %3493, %v1307_v25   ;;  %v3599_v36 = vpop.eup %3598  ;;  %v1772_v59 = vpack.c.bf16 %v3597_v52, %v3593_v0  ;;  %v1370_v4 = vmul.f32 1.442695, %v1323_v40  ;;  %v1362_v0 = vmul.f32 1.442695, %v1319_v35 }
 0x3c5   : > { %v1773_v32 = vpack.c.bf16 %v3599_v36, %v3595_v62  ;;  %v1356_v25 = vmul.f32 1.442695, %v5479_v16  ;;  %v1512_v46 = vpop.permute.xlu2 %1511  ;;  %v5484_v36 = vld [vmem:[#allocation43_spill] sm:$0xff] }
 0x3c6   : > { %v1402_v58 = vmul.f32 1.442695, %v1339_v26  ;;  %v1326_v26 = vsub.f32 %v4631_v50, %v4639_v18  ;;  %v1329_v50 = vsub.f32 %v4645_v20, %v4648_v41  ;;  %v1325_v20 = vsub.f32 %v4622_v37, %v4625_v43  ;;  %v5488_v37 = vld [vmem:[#allocation46_spill] sm:$0xff] }
 0x3c7   : > { %v1604_v43 = vsub.f32 %v5488_v37, %v1507_v23 }
 0x3c8   : > { %3600 = vpow2.f32 %v1402_v58  ;;  %v1376_v62 = vmul.f32 1.442695, %v1326_v26 }
 0x3c9   : > { %3602 = vpow2.f32 %v1364_v63 }
 0x3ca   : > { %1867 = vperm.xlu0 %3492, %v3591_v12   ;;  %3604 = vpow2.f32 %v1350_v1  ;;  %v5482_v12 = vld [vmem:[#allocation39_spill] sm:$0xff] }
 0x3cb   : > { %3606 = vpow2.f32 %v1370_v4  ;;  %v1601_v63 = vsub.f32 %v5482_v12, %v1497_v33  ;;  %v1382_v4 = vmul.f32 1.442695, %v1329_v50 }
 0x3cc   : > { %1832 = vperm.xlu1 %3493, %v3589_v39   ;;  %v5481_v39 = vld [vmem:[#allocation41_spill] sm:$0xff]  ;;  %3608 = vpow2.f32 %v1356_v25  ;;  %v1332_v25 = vsub.f32 %v4688_v22, %v4699_v56 }
 0x3cd   : > { %2188 = vmatmul.bf16.gmra.mxu3 %v1772_v59  ;;  %v1600_v58 = vsub.f32 %v5481_v39, %v1497_v33  ;;  %v1702_v51 = vmul.f32 1.442695, %v1601_v63  ;;  %3610 = vpow2.f32 %v1362_v0  ;;  %v4913_v18 = vpop.permute.xlu2 %1526  ;;  %v5487_v39 = vld [vmem:[#allocation49_spill] sm:$0xff]  ;;  %v1374_v0 = vmul.f32 1.442695, %v1325_v20 }
 0x3ce   : > { %v3601_v55 = vpop.eup %3600  ;;  %2277 = vmatmul.bf16.gmra.mxu0 %v1773_v32  ;;  %3612 = vpow2.f32 %v1376_v62  ;;  %v5485_v32 = vld [vmem:[#allocation55_spill] sm:$0xff] }
 0x3cf   : > { %1977 = vperm.xlu2 %3491, %v3601_v55   ;;  %v3603_v2 = vpop.eup %3602  ;;  %v1700_v44 = vmul.f32 1.442695, %v1600_v58  ;;  %v1322_v55 = vsub.f32 %v5485_v32, %v4575_v3  ;;  %v5486_v3 = vld [vmem:[#allocation51_spill] sm:$0xff]  ;;  %v1607_v58 = vsub.f32 %v5487_v39, %v1512_v46  ;;  %v5490_v32 = vsub.f32 %v4686_v38, %v4691_v47 }
 0x3d0   : > { %v3605_v7 = vpop.eup %3604  ;;  %v5494_v47 = vld [vmem:[#allocation59_spill] sm:$0xff] }
 0x3d1   : > { %v3607_v21 = vpop.eup %3606  ;;  %3614 = vpow2.f32 %v1700_v44  ;;  %v1368_v27 = vmul.f32 1.442695, %v1322_v55  ;;  %v1388_v44 = vmul.f32 1.442695, %v1332_v25  ;;  %v1380_v55 = vmul.f32 1.442695, %v5490_v32 }
 0x3d2   : > { %1882 = vperm.xlu0 %3492, %v3603_v2   ;;  %v3609_v40 = vpop.eup %3608  ;;  %3616 = vpow2.f32 %v1702_v51 }
 0x3d3   : > { %v3611_v2 = vpop.eup %3610 }
 0x3d4   : > { %1847 = vperm.xlu1 %3493, %v3605_v7   ;;  %v3613_v49 = vpop.eup %3612  ;;  %v1606_v7 = vsub.f32 %v5486_v3, %v1512_v46  ;;  %v1335_v46 = vsub.f32 %v4728_v6, %v4734_v5 }
 0x3d5   : > { %v4923_v12 = vpop.permute.xlu2 %1541 }
 0x3d6   : > { %v1712_v22 = vmul.f32 1.442695, %v1606_v7 }
 0x3d7   : > { %v3615_v16 = vpop.eup %3614 }
 0x3d8   : > { %v3617_v41 = vpop.eup %3616 }
 0x3d9   : > { %v1502_v1 = vpop.permute.xlu1 %1501 }
 0x3da   : > { %v1602_v52 = vsub.f32 %v5483_v28, %v1502_v1  ;;  %v1603_v57 = vsub.f32 %v5484_v36, %v1502_v1  ;;  %1897 = vperm.xlu0 %3492, %v3607_v21   ;;  %v5489_v21 = vld [vmem:[#allocation45_spill] sm:$0xff]  ;;  %v1714_v1 = vmul.f32 1.442695, %v1607_v58  ;;  %v1708_v28 = vmul.f32 1.442695, %v1604_v43  ;;  %v5496_v58 = vld [vmem:[#allocation60_spill] sm:$0xff] }
 0x3db   : > { %v1605_v51 = vsub.f32 %v5489_v21, %v1507_v23 }
 0x3dc   : > { %v1704_v33 = vmul.f32 1.442695, %v1602_v52  ;;  %v1706_v59 = vmul.f32 1.442695, %v1603_v57  ;;  %1862 = vperm.xlu1 %3493, %v3609_v40   ;;  %v3973_v57 = vmov 32  }
 0x3dd   : > { %v1710_v36 = vmul.f32 1.442695, %v1605_v51  ;;  %3496 = vset.pattern.permute.xlu2 %v3973_v57  ;;  %v1394_v40 = vmul.f32 1.442695, %v1335_v46  ;;  %v4930_v50 = vpop.permute.xlu2 %1556 }
 0x3de   : > { %3618 = vpow2.f32 %v1704_v33 }
 0x3df   : > { %3620 = vpow2.f32 %v1706_v59 }
 0x3e0   : > { %3622 = vpow2.f32 %v1382_v4 }
 0x3e1   : > { %3624 = vpow2.f32 %v1368_v27  ;;  %v1517_v4 = vpop.permute.xlu1 %1516  ;;  %v5491_v27 = vld [vmem:[#allocation56_spill] sm:$0xff] }
 0x3e2   : > { %1912 = vperm.xlu0 %3492, %v3613_v49   ;;  %3626 = vpow2.f32 %v1374_v0 }
 0x3e3   : > { %3628 = vpow2.f32 %v1388_v44 }
 0x3e4   : > { %v3619_v35 = vpop.eup %3618  ;;  %1877 = vperm.xlu1 %3493, %v3611_v2   ;;  %3630 = vpow2.f32 %v1712_v22  ;;  %v1522_v2 = vpop.permute.xlu0 %1521 }
 0x3e5   : > { %v3621_v26 = vpop.eup %3620  ;;  %v1774_v63 = vpack.c.bf16 %v3619_v35, %v3615_v16  ;;  %3632 = vpow2.f32 %v1714_v1  ;;  %v1608_v16 = vsub.f32 %v5491_v27, %v1517_v4  ;;  %v5493_v35 = vsub.f32 %v4730_v24, %v4737_v61  ;;  %v1828_v43 = vpop.permute.xlu2 %1827 }
 0x3e6   : > { %v1775_v62 = vpack.c.bf16 %v3621_v26, %v3617_v41  ;;  %v3623_v56 = vpop.eup %3622  ;;  %3634 = vpow2.f32 %v1708_v28  ;;  %v5492_v41 = vld [vmem:[#allocation57_spill] sm:$0xff]  ;;  %v1610_v3 = vsub.f32 %v5494_v47, %v1522_v2  ;;  %v5495_v26 = vsub.f32 %v4788_v11, %v4791_v42 }
 0x3e7   : > { %2193 = vmatmul.bf16.gmra.mxu3 %v1774_v63  ;;  %v3625_v52 = vpop.eup %3624  ;;  %3636 = vpow2.f32 %v1710_v36  ;;  %v1609_v25 = vsub.f32 %v5492_v41, %v1517_v4  ;;  %v1386_v38 = vmul.f32 1.442695, %v5493_v35  ;;  %v1611_v63 = vsub.f32 %v5496_v58, %v1522_v2 }
 0x3e8   : > { %2282 = vmatmul.bf16.gmra.mxu0 %v1775_v62  ;;  %v3627_v33 = vpop.eup %3626  ;;  %3638 = vpow2.f32 %v1394_v40  ;;  %v1400_v39 = vmul.f32 1.442695, %v5495_v26  ;;  %v1716_v0 = vmul.f32 1.442695, %v1608_v16  ;;  %v1720_v44 = vmul.f32 1.442695, %v1610_v3 }
 0x3e9   : > { %v3629_v59 = vpop.eup %3628  ;;  %3640 = vpow2.f32 %v1380_v55  ;;  %v1718_v62 = vmul.f32 1.442695, %v1609_v25  ;;  %v1722_v61 = vmul.f32 1.442695, %v1611_v63  ;;  %v1981_v21 = vmul.f32 0.0, %v1828_v43  ;;  %v1532_v28 = vpop.permute.xlu1 %1531  ;;  %v5498_v40 = vld [vmem:[#allocation64_spill] sm:$0xff] }
 0x3ea   : > { %1927 = vperm.xlu0 %3492, %v3623_v56   ;;  %v3631_v6 = vpop.eup %3630  ;;  %3642 = vpow2.f32 %v1386_v38  ;;  %v2241_v11 = vadd.f32 %v4750_v45, %v4752_v54  ;;  %v5497_v56 = vsub.f32 %v4794_v17, %v4801_v14  ;;  %v5499_v54 = vld [vmem:[#allocation65_spill] sm:$0xff]  ;;  %v5500_v55 = vld [vmem:[#allocation62_spill] sm:$0xff]  ;;  %v1398_v14 = vmul.f32 1.442695, %v1337_v48  ;;  %v5503_v63 = vld [vmem:[#allocation67_spill] sm:$0xff] }
 0x3eb   : > { %v3633_v5 = vpop.eup %3632  ;;  %3644 = vpow2.f32 %v1400_v39  ;;  %v1612_v4 = vsub.f32 %v5500_v55, %v4913_v18  ;;  %v5502_v26 = vld [vmem:[#allocation66_spill] sm:$0xff]  ;;  %v5504_v43 = vld [vmem:[#allocation68_spill] sm:$0xff] }
 0x3ec   : > { %1892 = vperm.xlu1 %3493, %v3625_v52   ;;  %v3635_v49 = vpop.eup %3634  ;;  %3646 = vpow2.f32 %v1716_v0  ;;  %v4947_v51 = vadd.f32 %v2241_v11, %v1981_v21  ;;  %v1392_v1 = vmul.f32 1.442695, %v5497_v56  ;;  %v1537_v48 = vpop.permute.xlu0 %1536  ;;  %v1618_v0 = vsub.f32 %v5503_v63, %v4923_v12 }
 0x3ed   : > { %v3637_v20 = vpop.eup %3636  ;;  %v1776_v23 = vpack.c.bf16 %v3631_v6, %v3635_v49  ;;  %3648 = vpow2.f32 %v1718_v62  ;;  %v4960_v6 = vpop.f32.mrf.mxu0  ;;  %v1724_v41 = vmul.f32 1.442695, %v1612_v4  ;;  %v1616_v3 = vsub.f32 %v4634_v10, %v1537_v48 }
 0x3ee   : > { %v1777_v7 = vpack.c.bf16 %v3633_v5, %v3637_v20  ;;  %v3639_v37 = vpop.eup %3638  ;;  %3650 = vpow2.f32 %v1720_v44  ;;  %v5501_v5 = vld [vmem:[#allocation63_spill] sm:$0xff]  ;;  %v4964_v49 = vpop.f32.mrf.mxu3  ;;  %v1617_v39 = vsub.f32 %v5502_v26, %v1537_v48  ;;  %v1619_v62 = vsub.f32 %v5504_v43, %v4923_v12 }
 0x3ef   : > { %v3641_v24 = vpop.eup %3640  ;;  %3652 = vpow2.f32 %v1722_v61  ;;  %v1613_v2 = vsub.f32 %v5501_v5, %v4913_v18  ;;  %v1732_v44 = vmul.f32 1.442695, %v1616_v3  ;;  %v1736_v61 = vmul.f32 1.442695, %v1618_v0  ;;  %v5509_v5 = vld [vmem:[#allocation75_spill] sm:$0xff] }
 0x3f0   : > { %v3643_v42 = vpop.eup %3642  ;;  %3654 = vrcp.f32 %v4947_v51  ;;  %v1738_v10 = vmul.f32 1.442695, %v1619_v62 }
 0x3f1   : > { %v3645_v22 = vpop.eup %3644  ;;  %3656 = vpow2.f32 %v1392_v1 }
 0x3f2   : > { %1942 = vperm.xlu0 %3492, %v3629_v59   ;;  %v3647_v52 = vpop.eup %3646  ;;  %v1615_v59 = vsub.f32 %v5499_v54, %v1532_v28  ;;  %3658 = vpow2.f32 %v1398_v14 }
 0x3f3   : > { %v3649_v46 = vpop.eup %3648  ;;  %v1547_v12 = vpop.permute.xlu1 %1546 }
 0x3f4   : > { %1907 = vperm.xlu1 %3493, %v3627_v33   ;;  %v3651_v36 = vpop.eup %3650  ;;  %v1614_v33 = vsub.f32 %v5498_v40, %v1532_v28  ;;  %v1730_v16 = vmul.f32 1.442695, %v1615_v59  ;;  %v5505_v28 = vld [vmem:[#allocation72_spill] sm:$0xff] }
 0x3f5   : > { %v3653_v45 = vpop.eup %3652  ;;  %v1778_v32 = vpack.c.bf16 %v3651_v36, %v3647_v52  ;;  %v4967_v8 = vpop.f32.mrf.mxu0 }
 0x3f6   : > { %v1779_v17 = vpack.c.bf16 %v3653_v45, %v3649_v46  ;;  %v1728_v27 = vmul.f32 1.442695, %v1614_v33  ;;  %v3655_v20 = vpop.eup %3654  ;;  %v4969_v35 = vpop.f32.mrf.mxu3  ;;  %v5506_v33 = vld [vmem:[#allocation71_spill] sm:$0xff] }
 0x3f7   : > { %2198 = vmatmul.bf16.gmra.mxu3 %v1776_v23  ;;  %v3657_v25 = vpop.eup %3656  ;;  %v1726_v23 = vmul.f32 1.442695, %v1613_v2 }
 0x3f8   : > { %2287 = vmatmul.bf16.gmra.mxu0 %v1777_v7  ;;  %3660 = vpow2.f32 %v1728_v27  ;;  %v3659_v31 = vpop.eup %3658 }
 0x3f9   : > { %3662 = vpow2.f32 %v1730_v16 }
 0x3fa   : > { %1957 = vperm.xlu0 %3492, %v3639_v37   ;;  %3664 = vpow2.f32 %v1724_v41 }
 0x3fb   : > { %3666 = vpow2.f32 %v1726_v23 }
 0x3fc   : > { %1922 = vperm.xlu1 %3493, %v3641_v24   ;;  %v1734_v24 = vmul.f32 1.442695, %v1617_v39  ;;  %3668 = vpow2.f32 %v1732_v44 }
 0x3fd   : > { %v4977_v21 = vpop.f32.mrf.mxu0 }
 0x3fe   : > { %v3661_v18 = vpop.eup %3660  ;;  %v4979_v11 = vpop.f32.mrf.mxu3  ;;  %3670 = vpow2.f32 %v1734_v24  ;;  %v5511_v24 = vld [vmem:[#allocation73_spill] sm:$0xff] }
 0x3ff   : > { %v3663_v38 = vpop.eup %3662  ;;  %3672 = vpow2.f32 %v1736_v61  ;;  %v1625_v61 = vsub.f32 %v5511_v24, %v4930_v50 }
 0x400   : > { %v3665_v47 = vpop.eup %3664  ;;  %3674 = vpow2.f32 %v1738_v10 }
 0x401   : > { %v3667_v7 = vpop.eup %3666  ;;  %v1780_v58 = vpack.c.bf16 %v3661_v18, %v3665_v47 }
 0x402   : > { %1972 = vperm.xlu0 %3492, %v3645_v22   ;;  %v1781_v37 = vpack.c.bf16 %v3663_v38, %v3667_v7  ;;  %v3669_v22 = vpop.eup %3668 }
 0x404   : > { %1937 = vperm.xlu1 %3493, %v3643_v42   ;;  %v3671_v56 = vpop.eup %3670 }
 0x405   : > { %v3673_v1 = vpop.eup %3672  ;;  %v4983_v40 = vpop.f32.mrf.mxu0 }
 0x406   : > { %v3675_v36 = vpop.eup %3674  ;;  %v1782_v59 = vpack.c.bf16 %v3673_v1, %v3669_v22 }
 0x407   : > { %2203 = vmatmul.bf16.gmra.mxu3 %v1778_v32  ;;  %v4986_v32 = vpop.f32.mrf.mxu3  ;;  %v1783_v4 = vpack.c.bf16 %v3675_v36, %v3671_v56 }
 0x408   : > { %2292 = vmatmul.bf16.gmra.mxu0 %v1779_v17  ;;  %v5508_v17 = vld [vmem:[#allocation70_spill] sm:$0xff] }
 0x409   : > { %v1621_v14 = vsub.f32 %v5508_v17, %v1547_v12 }
 0x40a   : > { %3495 = vset.pattern.permute.xlu0 %v3973_v57 }
 0x40b   : > { %2489 = vperm.xlu0 %3495, %v3655_v20   ;;  %v1742_v41 = vmul.f32 1.442695, %v1621_v14 }
 0x40c   : > { %1952 = vperm.xlu1 %3493, %v3657_v25  }
 0x40d   : > { %v2268_v23 = vpop.f32.mrf.mxu0 }
 0x40f   : > { %v2179_v48 = vpop.f32.mrf.mxu3 }
 0x414   : > { %1967 = vperm.xlu1 %3493, %v3659_v31  }
 0x415   : > { %v5004_v10 = vpop.f32.mrf.mxu0 }
 0x417   : > { %2208 = vmatmul.bf16.gmra.mxu3 %v1780_v58  ;;  %v2254_v58 = vadd.f32 %v4827_v19, %v4831_v9  ;;  %v5010_v19 = vpop.f32.mrf.mxu3  ;;  %v1843_v9 = vpop.permute.xlu2 %1842 }
 0x418   : > { %2297 = vmatmul.bf16.gmra.mxu0 %v1781_v37  ;;  %v5510_v37 = vld [vmem:[#allocation74_spill] sm:$0xff] }
 0x419   : > { %v1624_v43 = vsub.f32 %v5510_v37, %v4930_v50  ;;  %v1750_v50 = vmul.f32 1.442695, %v1625_v61 }
 0x41c   : > { %v1552_v42 = vpop.permute.xlu0 %1551  ;;  %3494 = vset.pattern.permute.xlu1 %v3973_v57  ;;  %v5507_v57 = vld [vmem:[#allocation69_spill] sm:$0xff] }
 0x41d   : > { %v1622_v52 = vsub.f32 %v5505_v28, %v1552_v42  ;;  %v1623_v45 = vsub.f32 %v5506_v33, %v1552_v42  ;;  %v1620_v55 = vsub.f32 %v5507_v57, %v1547_v12  ;;  %v1748_v28 = vmul.f32 1.442695, %v1624_v43  ;;  %v5512_v57 = vld [vmem:[#allocation76_spill] sm:$0xff] }
 0x41f   : > { %v1744_v27 = vmul.f32 1.442695, %v1622_v52  ;;  %v1746_v16 = vmul.f32 1.442695, %v1623_v45  ;;  %v1740_v20 = vmul.f32 1.442695, %v1620_v55  ;;  %v1858_v17 = vpop.permute.xlu2 %1857 }
 0x424   : > { %v1823_v46 = vpop.permute.xlu0 %1822 }
 0x425   : > { %v1980_v54 = vmul.f32 0.0, %v1823_v46  ;;  %v2261_v46 = vadd.f32 %v4967_v8, %v4969_v35  ;;  %v1984_v35 = vmul.f32 0.0, %v1843_v9 }
 0x427   : > { %v4991_v2 = vadd.f32 %v5509_v5, %v1980_v54  ;;  %2213 = vmatmul.bf16.gmra.mxu3 %v1782_v59 }
 0x428   : > { %2302 = vmatmul.bf16.gmra.mxu0 %v1783_v4 }
 0x429   : > { %3676 = vrcp.f32 %v4991_v2 }
 0x42a   : > { %3678 = vpow2.f32 %v1744_v27 }
 0x42b   : > { %3680 = vpow2.f32 %v1746_v16  ;;  %v2269_v16 = vadd.f32 %v2268_v23, %v2179_v48 }
 0x42c   : > { %v1838_v25 = vpop.permute.xlu0 %1837  ;;  %3682 = vpow2.f32 %v1740_v20 }
 0x42d   : > { %v1983_v31 = vmul.f32 0.0, %v1838_v25  ;;  %3684 = vpow2.f32 %v1742_v41  ;;  %v5027_v25 = vadd.f32 %v4783_v53, %v1984_v35  ;;  %v1987_v53 = vmul.f32 0.0, %v1858_v17 }
 0x42f   : > { %v3677_v18 = vpop.eup %3676  ;;  %v4995_v38 = vadd.f32 %v4769_v29, %v1983_v31  ;;  %v5039_v37 = vadd.f32 %v4844_v60, %v1987_v53 }
 0x430   : > { %2484 = vperm.xlu1 %3494, %v3677_v18   ;;  %v3679_v47 = vpop.eup %3678 }
 0x431   : > { %3686 = vrcp.f32 %v4995_v38  ;;  %v3681_v3 = vpop.eup %3680 }
 0x432   : > { %v3683_v7 = vpop.eup %3682 }
 0x433   : > { %v3685_v39 = vpop.eup %3684  ;;  %v1784_v0 = vpack.c.bf16 %v3679_v47, %v3683_v7 }
 0x434   : > { %v1853_v26 = vpop.permute.xlu0 %1852  ;;  %v1785_v44 = vpack.c.bf16 %v3681_v3, %v3685_v39  ;;  %v2251_v3 = vadd.f32 %v4818_v34, %v4821_v30  ;;  %v1873_v30 = vpop.permute.xlu2 %1872 }
 0x435   : > { %v1986_v63 = vmul.f32 0.0, %v1853_v26  ;;  %v1990_v9 = vmul.f32 0.0, %v1873_v30 }
 0x436   : > { %v1562_v62 = vpop.permute.xlu1 %1561 }
 0x437   : > { %v3687_v29 = vpop.eup %3686  ;;  %v5006_v42 = vadd.f32 %v2254_v58, %v1986_v63  ;;  %v1626_v22 = vsub.f32 %v4775_v13, %v1562_v62  ;;  %v1627_v56 = vsub.f32 %v4777_v15, %v1562_v62  ;;  %2218 = vmatmul.bf16.gmra.mxu3 %v1784_v0 }
 0x438   : > { %2307 = vmatmul.bf16.gmra.mxu0 %v1785_v44  ;;  %2499 = vperm.xlu1 %3494, %v3687_v29   ;;  %v2259_v44 = vadd.f32 %v4960_v6, %v4964_v49  ;;  %v2264_v6 = vadd.f32 %v4977_v21, %v4979_v11  ;;  %v2271_v21 = vadd.f32 %v5004_v10, %v5010_v19 }
 0x439   : > { %3688 = vrcp.f32 %v5006_v42  ;;  %v1752_v12 = vmul.f32 1.442695, %v1626_v22  ;;  %v1754_v1 = vmul.f32 1.442695, %v1627_v56 }
 0x43b   : > { %3690 = vpow2.f32 %v1752_v12  ;;  %v5015_v33 = vpop.f32.mrf.mxu0  ;;  %v5052_v12 = vadd.f32 %v2264_v6, %v1990_v9 }
 0x43c   : > { %v1868_v52 = vpop.permute.xlu0 %1867  ;;  %3692 = vpow2.f32 %v1754_v1 }
 0x43d   : > { %v1989_v13 = vmul.f32 0.0, %v1868_v52  ;;  %3694 = vpow2.f32 %v1748_v28  ;;  %v1888_v52 = vpop.permute.xlu2 %1887 }
 0x43e   : > { %v1833_v15 = vpop.permute.xlu1 %1832  ;;  %3696 = vpow2.f32 %v1750_v50  ;;  %v2266_v50 = vadd.f32 %v4983_v40, %v4986_v32  ;;  %v1993_v11 = vmul.f32 0.0, %v1888_v52 }
 0x43f   : > { %v3689_v36 = vpop.eup %3688  ;;  %v5017_v45 = vadd.f32 %v2261_v46, %v1989_v13  ;;  %v1982_v54 = vmul.f32 0.0, %v1833_v15 }
 0x440   : > { %v5019_v59 = vpop.f32.mrf.mxu3  ;;  %2514 = vperm.xlu0 %3495, %v3689_v36   ;;  %v5064_v32 = vadd.f32 %v2271_v21, %v1993_v11  ;;  %v2709_v11 = vld [vmem:[%s4152_s5 + $0x8] sm:$0xff] }
 0x441   : > { %3698 = vrcp.f32 %v5017_v45  ;;  %v5023_v55 = vadd.f32 %v5512_v57, %v1982_v54  ;;  %v3691_v8 = vpop.eup %3690  ;;  %v2274_v35 = vadd.f32 %v5015_v33, %v5019_v59 }
 0x442   : > { %v3693_v4 = vpop.eup %3692 }
 0x443   : > { %3700 = vrcp.f32 %v5023_v55  ;;  %v3695_v14 = vpop.eup %3694  ;;  %v2275_v58 = vpop.f32.mrf.mxu0 }
 0x444   : > { %v1883_v5 = vpop.permute.xlu0 %1882  ;;  %v3697_v27 = vpop.eup %3696  ;;  %v1786_v41 = vpack.c.bf16 %v3691_v8, %v3695_v14 }
 0x445   : > { %v1992_v20 = vmul.f32 0.0, %v1883_v5  ;;  %v1787_v18 = vpack.c.bf16 %v3693_v4, %v3697_v27  ;;  %v1903_v5 = vpop.permute.xlu2 %1902 }
 0x446   : > { %v1848_v31 = vpop.permute.xlu1 %1847 }
 0x447   : > { %v3699_v47 = vpop.eup %3698  ;;  %v5031_v7 = vadd.f32 %v2269_v16, %v1992_v20  ;;  %v1985_v26 = vmul.f32 0.0, %v1848_v31  ;;  %2223 = vmatmul.bf16.gmra.mxu3 %v1786_v41  ;;  %v1996_v16 = vmul.f32 0.0, %v1903_v5 }
 0x448   : > { %2312 = vmatmul.bf16.gmra.mxu0 %v1787_v18  ;;  %2529 = vperm.xlu0 %3495, %v3699_v47   ;;  %v2186_v48 = vpop.f32.mrf.mxu3 }
 0x449   : > { %v3701_v39 = vpop.eup %3700  ;;  %3702 = vrcp.f32 %v5031_v7  ;;  %v5034_v23 = vadd.f32 %v2251_v3, %v1985_v26  ;;  %v2276_v63 = vadd.f32 %v2275_v58, %v2186_v48 }
 0x44a   : > { %3704 = vrcp.f32 %v5027_v25  ;;  %2494 = vperm.xlu2 %3496, %v3701_v39  }
 0x44b   : > { %3706 = vrcp.f32 %v5034_v23  ;;  %v2278_v60 = vpop.f32.mrf.mxu0 }
 0x44c   : > { %v1898_v34 = vpop.permute.xlu0 %1897 }
 0x44d   : > { %v1995_v0 = vmul.f32 0.0, %v1898_v34 }
 0x44e   : > { %v1863_v43 = vpop.permute.xlu1 %1862 }
 0x44f   : > { %v3703_v62 = vpop.eup %3702  ;;  %v5043_v29 = vadd.f32 %v2276_v63, %v1995_v0  ;;  %v1988_v24 = vmul.f32 0.0, %v1863_v43  ;;  %v1918_v0 = vpop.permute.xlu2 %1917 }
 0x450   : > { %v3705_v61 = vpop.eup %3704  ;;  %2544 = vperm.xlu0 %3495, %v3703_v62   ;;  %v2189_v15 = vpop.f32.mrf.mxu3 }
 0x451   : > { %v3707_v22 = vpop.eup %3706  ;;  %3708 = vrcp.f32 %v5043_v29  ;;  %v5046_v56 = vadd.f32 %v2259_v44, %v1988_v24  ;;  %v2279_v10 = vadd.f32 %v2278_v60, %v2189_v15  ;;  %v1999_v44 = vmul.f32 0.0, %v1918_v0 }
 0x452   : > { %3710 = vrcp.f32 %v5039_v37  ;;  %2504 = vperm.xlu2 %3496, %v3705_v61   ;;  %2509 = vperm.xlu1 %3494, %v3707_v22  }
 0x453   : > { %3712 = vrcp.f32 %v5046_v56  ;;  %v2280_v40 = vpop.f32.mrf.mxu0  ;;  %v5074_v31 = vadd.f32 %v2279_v10, %v1996_v16 }
 0x454   : > { %v1913_v49 = vpop.permute.xlu0 %1912  ;;  %3714 = vrcp.f32 %v5052_v12 }
 0x455   : > { %v1998_v58 = vmul.f32 0.0, %v1913_v49 }
 0x456   : > { %v1878_v1 = vpop.permute.xlu1 %1877 }
 0x457   : > { %v3709_v28 = vpop.eup %3708  ;;  %v1991_v46 = vmul.f32 0.0, %v1878_v1 }
 0x458   : > { %v3711_v13 = vpop.eup %3710  ;;  %2559 = vperm.xlu0 %3495, %v3709_v28   ;;  %v2191_v19 = vpop.f32.mrf.mxu3 }
 0x459   : > { %v3713_v36 = vpop.eup %3712  ;;  %v5056_v54 = vadd.f32 %v2266_v50, %v1991_v46  ;;  %v2281_v59 = vadd.f32 %v2280_v40, %v2191_v19 }
 0x45a   : > { %2519 = vperm.xlu2 %3496, %v3711_v13   ;;  %2524 = vperm.xlu1 %3494, %v3713_v36   ;;  %v3715_v17 = vpop.eup %3714  ;;  %v5092_v13 = vstv %s2674_s21  ;;  %v1933_v36 = vpop.permute.xlu2 %1932 }
 0x45b   : > { %3716 = vrcp.f32 %v5056_v54 }
 0x45c   : > { %v5062_v57 = vpop.permute.xlu0 %1927  ;;  %3718 = vrcp.f32 %v5064_v32 }
 0x45e   : > { %v1893_v8 = vpop.permute.xlu1 %1892 }
 0x45f   : > { %v1994_v4 = vmul.f32 0.0, %v1893_v8 }
 0x461   : > { %v3717_v14 = vpop.eup %3716  ;;  %v5068_v27 = vadd.f32 %v2274_v35, %v1994_v4  ;;  %v2001_v4 = vmul.f32 0.0, %v5062_v57 }
 0x462   : > { %2534 = vperm.xlu2 %3496, %v3715_v17   ;;  %2539 = vperm.xlu1 %3494, %v3717_v14   ;;  %v3719_v47 = vpop.eup %3718  ;;  %v1948_v19 = vpop.permute.xlu2 %1947 }
 0x463   : > { %3720 = vrcp.f32 %v5068_v27 }
 0x464   : > { %v5072_v20 = vpop.permute.xlu0 %1942  ;;  %3722 = vrcp.f32 %v5074_v31 }
 0x465   : > { %v2283_v41 = vpop.f32.mrf.mxu0 }
 0x466   : > { %v1908_v33 = vpop.permute.xlu1 %1907 }
 0x467   : > { %v1997_v18 = vmul.f32 0.0, %v1908_v33 }
 0x469   : > { %v3721_v3 = vpop.eup %3720  ;;  %v5076_v26 = vadd.f32 %v2281_v59, %v1997_v18 }
 0x46a   : > { %v2194_v39 = vpop.f32.mrf.mxu3  ;;  %2549 = vperm.xlu2 %3496, %v3719_v47   ;;  %2554 = vperm.xlu1 %3494, %v3721_v3   ;;  %v3723_v63 = vpop.eup %3722 }
 0x46b   : > { %3724 = vrcp.f32 %v5076_v26  ;;  %v2284_v53 = vadd.f32 %v2283_v41, %v2194_v39  ;;  %v2002_v41 = vmul.f32 0.0, %v1933_v36  ;;  %v5110_v3 = vpop.permute.xlu2 %1962  ;;  %v2708_v36 = vld [vmem:[%s4152_s5] sm:$0xff] }
 0x46c   : > { %v5080_v48 = vpop.permute.xlu0 %1957 }
 0x46d   : > { %v5082_v34 = vadd.f32 %v2284_v53, %v1998_v58  ;;  %v2285_v30 = vpop.f32.mrf.mxu0 }
 0x46e   : > { %v1923_v6 = vpop.permute.xlu1 %1922 }
 0x46f   : > { %3726 = vrcp.f32 %v5082_v34  ;;  %v2000_v1 = vmul.f32 0.0, %v1923_v6 }
 0x471   : > { %v3725_v43 = vpop.eup %3724 }
 0x472   : > { %v2196_v62 = vpop.f32.mrf.mxu3  ;;  %2564 = vperm.xlu2 %3496, %v3723_v63   ;;  %2569 = vperm.xlu1 %3494, %v3725_v43  }
 0x473   : > { %v2286_v24 = vadd.f32 %v2285_v30, %v2196_v62 }
 0x474   : > { %v5085_v61 = vpop.permute.xlu0 %1972 }
 0x475   : > { %v3727_v22 = vpop.eup %3726  ;;  %v5087_v9 = vadd.f32 %v2286_v24, %v1999_v44  ;;  %v2288_v60 = vpop.f32.mrf.mxu0  ;;  %v2004_v44 = vmul.f32 0.0, %v5072_v20 }
 0x476   : > { %2574 = vperm.xlu0 %3495, %v3727_v22   ;;  %v1938_v10 = vpop.permute.xlu1 %1937  ;;  %v5118_v22 = vpop.permute.xlu2 %1977 }
 0x477   : > { %3728 = vrcp.f32 %v5087_v9  ;;  %v2003_v58 = vmul.f32 0.0, %v1938_v10 }
 0x47a   : > { %v2199_v49 = vpop.f32.mrf.mxu3 }
 0x47b   : > { %v2289_v28 = vadd.f32 %v2288_v60, %v2199_v49 }
 0x47d   : > { %v3729_v50 = vpop.eup %3728  ;;  %v5090_v52 = vadd.f32 %v2289_v28, %v2000_v1  ;;  %v2290_v46 = vpop.f32.mrf.mxu0 }
 0x47e   : > { %v2490_v15 = vpop.permute.xlu0 %2489  ;;  %2579 = vperm.xlu2 %3496, %v3729_v50   ;;  %v1953_v47 = vpop.permute.xlu1 %1952  ;;  %v2005_v50 = vmul.f32 0.0, %v1948_v19 }
 0x47f   : > { %v2643_v21 = vmul.f32 %v2490_v15, %v4947_v51  ;;  %3730 = vrcp.f32 %v5090_v52  ;;  %v2006_v19 = vmul.f32 0.0, %v1953_v47 }
 0x481   : > { %v2677_v40 = vmul.f32 %v5092_v13, %v2643_v21 }
 0x482   : > { %v2201_v35 = vpop.f32.mrf.mxu3 }
 0x483   : > { %v2741_v8 = vadd.f32 %v2709_v11, %v2677_v40  ;;  %v2291_v17 = vadd.f32 %v2290_v46, %v2201_v35 }
 0x485   : > { %2773 = vst [vmem:[%s5101_s14 + $0x8] sm:$0xff] %v2741_v8  ;;  %v3731_v14 = vpop.eup %3730  ;;  %v5104_v5 = vadd.f32 %v2291_v17, %v2001_v4  ;;  %v2293_v51 = vpop.f32.mrf.mxu0  ;;  %v2710_v4 = vld [vmem:[%s4152_s5 + $0x10] sm:$0xff] }
 0x486   : > { %2584 = vperm.xlu1 %3494, %v3731_v14   ;;  %v5115_v43 = vpop.permute.xlu1 %1967 }
 0x487   : > { %3732 = vrcp.f32 %v5104_v5 }
 0x48a   : > { %v2204_v16 = vpop.f32.mrf.mxu3 }
 0x48b   : > { %v2294_v33 = vadd.f32 %v2293_v51, %v2204_v16 }
 0x48d   : > { %v3733_v59 = vpop.eup %3732  ;;  %v5107_v57 = vadd.f32 %v2294_v33, %v2002_v41  ;;  %v2295_v18 = vpop.f32.mrf.mxu0  ;;  %v2711_v33 = vld [vmem:[%s4152_s5 + $0x18] sm:$0xff] }
 0x48e   : > { %2589 = vperm.xlu0 %3495, %v3733_v59  }
 0x48f   : > { %3734 = vrcp.f32 %v5107_v57 }
 0x492   : > { %v2206_v39 = vpop.f32.mrf.mxu3 }
 0x493   : > { %v2296_v53 = vadd.f32 %v2295_v18, %v2206_v39 }
 0x495   : > { %v3735_v30 = vpop.eup %3734  ;;  %v5112_v63 = vadd.f32 %v2296_v53, %v2003_v58  ;;  %v2298_v0 = vpop.f32.mrf.mxu0 }
 0x496   : > { %2594 = vperm.xlu2 %3496, %v3735_v30   ;;  %v2712_v30 = vld [vmem:[%s4152_s5 + $0x20] sm:$0xff] }
 0x497   : > { %3736 = vrcp.f32 %v5112_v63 }
 0x49a   : > { %v2209_v62 = vpop.f32.mrf.mxu3 }
 0x49b   : > { %v2299_v24 = vadd.f32 %v2298_v0, %v2209_v62 }
 0x49d   : > { %v3737_v60 = vpop.eup %3736  ;;  %v5120_v6 = vadd.f32 %v2299_v24, %v2004_v44  ;;  %v2300_v49 = vpop.f32.mrf.mxu0  ;;  %v2007_v24 = vmul.f32 0.0, %v5080_v48 }
 0x49e   : > { %2599 = vperm.xlu1 %3494, %v3737_v60  }
 0x49f   : > { %3738 = vrcp.f32 %v5120_v6 }
 0x4a2   : > { %v2211_v1 = vpop.f32.mrf.mxu3  ;;  %v2485_v28 = vpop.permute.xlu1 %2484 }
 0x4a3   : > { %v2301_v46 = vadd.f32 %v2300_v49, %v2211_v1  ;;  %v2642_v15 = vmul.f32 %v2485_v28, %v4991_v2 }
 0x4a4   : > { %v2495_v20 = vpop.permute.xlu2 %2494 }
 0x4a5   : > { %v3739_v21 = vpop.eup %3738  ;;  %v5125_v11 = vadd.f32 %v2301_v46, %v2005_v50  ;;  %v2676_v40 = vmul.f32 %v5092_v13, %v2642_v15  ;;  %v2303_v8 = vpop.f32.mrf.mxu0  ;;  %v2644_v35 = vmul.f32 %v2495_v20, %v5023_v55  ;;  %v2715_v20 = vld [vmem:[%s4152_s5 + $0x38] sm:$0xff] }
 0x4a6   : > { %2604 = vperm.xlu0 %3495, %v3739_v21  }
 0x4a7   : > { %3740 = vrcp.f32 %v5125_v11  ;;  %v2740_v17 = vadd.f32 %v2708_v36, %v2676_v40  ;;  %v2678_v14 = vmul.f32 %v5092_v13, %v2644_v35  ;;  %v2008_v35 = vmul.f32 0.0, %v5110_v3 }
 0x4a9   : > { %2772 = vst [vmem:[%s5101_s14] sm:$0xff] %v2740_v17  ;;  %v2742_v2 = vadd.f32 %v2710_v4, %v2678_v14 }
 0x4aa   : > { %v2214_v51 = vpop.f32.mrf.mxu3  ;;  %v2500_v10 = vpop.permute.xlu1 %2499 }
 0x4ab   : > { %2774 = vst [vmem:[%s5101_s14 + $0x10] sm:$0xff] %v2742_v2  ;;  %v2304_v16 = vadd.f32 %v2303_v8, %v2214_v51  ;;  %v2645_v41 = vmul.f32 %v2500_v10, %v4995_v38 }
 0x4ac   : > { %v2505_v55 = vpop.permute.xlu2 %2504 }
 0x4ad   : > { %v3741_v59 = vpop.eup %3740  ;;  %v5136_v18 = vadd.f32 %v2304_v16, %v2006_v19  ;;  %v2679_v39 = vmul.f32 %v5092_v13, %v2645_v41  ;;  %v2305_v58 = vpop.f32.mrf.mxu0  ;;  %v2646_v53 = vmul.f32 %v2505_v55, %v5027_v25  ;;  %v2714_v25 = vld [vmem:[%s4152_s5 + $0x30] sm:$0xff] }
 0x4ae   : > { %2609 = vperm.xlu2 %3496, %v3741_v59   ;;  %v2718_v41 = vld [vmem:[%s4152_s5 + $0x50] sm:$0xff] }
 0x4af   : > { %3742 = vrcp.f32 %v5136_v18  ;;  %v2743_v47 = vadd.f32 %v2711_v33, %v2679_v39  ;;  %v2680_v0 = vmul.f32 %v5092_v13, %v2646_v53  ;;  %v2009_v39 = vmul.f32 0.0, %v5115_v43  ;;  %v2720_v53 = vld [vmem:[%s4152_s5 + $0x60] sm:$0xff]  ;;  %v2713_v43 = vld [vmem:[%s4152_s5 + $0x28] sm:$0xff] }
 0x4b1   : > { %2775 = vst [vmem:[%s5101_s14 + $0x18] sm:$0xff] %v2743_v47  ;;  %v2744_v38 = vadd.f32 %v2712_v30, %v2680_v0 }
 0x4b2   : > { %v2515_v62 = vpop.permute.xlu0 %2514  ;;  %v2216_v44 = vpop.f32.mrf.mxu3 }
 0x4b3   : > { %2776 = vst [vmem:[%s5101_s14 + $0x20] sm:$0xff] %v2744_v38  ;;  %v2648_v60 = vmul.f32 %v2515_v62, %v5006_v42  ;;  %v2306_v49 = vadd.f32 %v2305_v58, %v2216_v44 }
 0x4b4   : > { %v2520_v1 = vpop.permute.xlu2 %2519 }
 0x4b5   : > { %v3743_v28 = vpop.eup %3742  ;;  %v2682_v50 = vmul.f32 %v5092_v13, %v2648_v60  ;;  %v5149_v46 = vadd.f32 %v2306_v49, %v2007_v24  ;;  %v2308_v15 = vpop.f32.mrf.mxu0  ;;  %v2649_v36 = vmul.f32 %v2520_v1, %v5039_v37  ;;  %v2717_v37 = vld [vmem:[%s4152_s5 + $0x48] sm:$0xff] }
 0x4b6   : > { %2614 = vperm.xlu1 %3494, %v3743_v28   ;;  %v2721_v60 = vld [vmem:[%s4152_s5 + $0x68] sm:$0xff] }
 0x4b7   : > { %v2746_v48 = vadd.f32 %v2714_v25, %v2682_v50  ;;  %3744 = vrcp.f32 %v5149_v46  ;;  %v2683_v42 = vmul.f32 %v5092_v13, %v2649_v36 }
 0x4b9   : > { %2778 = vst [vmem:[%s5101_s14 + $0x30] sm:$0xff] %v2746_v48  ;;  %v2747_v21 = vadd.f32 %v2715_v20, %v2683_v42  ;;  %v2723_v48 = vld [vmem:[%s4152_s5 + $0x78] sm:$0xff] }
 0x4ba   : > { %v2530_v40 = vpop.permute.xlu0 %2529  ;;  %v2219_v8 = vpop.f32.mrf.mxu3 }
 0x4bb   : > { %2779 = vst [vmem:[%s5101_s14 + $0x38] sm:$0xff] %v2747_v21  ;;  %v2651_v4 = vmul.f32 %v2530_v40, %v5017_v45  ;;  %v2309_v17 = vadd.f32 %v2308_v15, %v2219_v8  ;;  %v2010_v15 = vmul.f32 0.0, %v5085_v61  ;;  %v2724_v61 = vld [vmem:[%s4152_s5 + $0x80] sm:$0xff] }
 0x4bc   : > { %v2535_v14 = vpop.permute.xlu2 %2534 }
 0x4bd   : > { %v3745_v2 = vpop.eup %3744  ;;  %v2685_v51 = vmul.f32 %v5092_v13, %v2651_v4  ;;  %v5161_v10 = vadd.f32 %v2309_v17, %v2008_v35  ;;  %v2652_v19 = vmul.f32 %v2535_v14, %v5052_v12  ;;  %v2310_v16 = vpop.f32.mrf.mxu0 }
 0x4be   : > { %2619 = vperm.xlu0 %3495, %v3745_v2  }
 0x4bf   : > { %v2749_v3 = vadd.f32 %v2717_v37, %v2685_v51  ;;  %3746 = vrcp.f32 %v5161_v10  ;;  %v2686_v45 = vmul.f32 %v5092_v13, %v2652_v19  ;;  %v2716_v37 = vld [vmem:[%s4152_s5 + $0x40] sm:$0xff] }
 0x4c1   : > { %2781 = vst [vmem:[%s5101_s14 + $0x48] sm:$0xff] %v2749_v3  ;;  %v2750_v33 = vadd.f32 %v2718_v41, %v2686_v45 }
 0x4c2   : > { %v2545_v55 = vpop.permute.xlu0 %2544  ;;  %v2221_v59 = vpop.f32.mrf.mxu3 }
 0x4c3   : > { %2782 = vst [vmem:[%s5101_s14 + $0x50] sm:$0xff] %v2750_v33  ;;  %v2654_v58 = vmul.f32 %v2545_v55, %v5031_v7  ;;  %v2311_v12 = vadd.f32 %v2310_v16, %v2221_v59  ;;  %v2719_v59 = vld [vmem:[%s4152_s5 + $0x58] sm:$0xff] }
 0x4c4   : > { %v2550_v30 = vpop.permute.xlu2 %2549  ;;  %v2510_v47 = vpop.permute.xlu1 %2509 }
 0x4c5   : > { %v3747_v0 = vpop.eup %3746  ;;  %v2688_v38 = vmul.f32 %v5092_v13, %v2654_v58  ;;  %v5173_v62 = vadd.f32 %v2311_v12, %v2009_v39  ;;  %v2655_v44 = vmul.f32 %v2550_v30, %v5064_v32  ;;  %v2647_v24 = vmul.f32 %v2510_v47, %v5034_v23  ;;  %v2313_v1 = vpop.f32.mrf.mxu0 }
 0x4c6   : > { %2624 = vperm.xlu2 %3496, %v3747_v0  }
 0x4c7   : > { %v2752_v7 = vadd.f32 %v2720_v53, %v2688_v38  ;;  %3748 = vrcp.f32 %v5173_v62  ;;  %v2689_v49 = vmul.f32 %v5092_v13, %v2655_v44  ;;  %v2681_v25 = vmul.f32 %v5092_v13, %v2647_v24  ;;  %v2727_v53 = vld [vmem:[%s4152_s5 + $0x98] sm:$0xff]  ;;  %v2722_v44 = vld [vmem:[%s4152_s5 + $0x70] sm:$0xff] }
 0x4c9   : > { %2784 = vst [vmem:[%s5101_s14 + $0x60] sm:$0xff] %v2752_v7  ;;  %v2753_v28 = vadd.f32 %v2721_v60, %v2689_v49  ;;  %v2745_v50 = vadd.f32 %v2713_v43, %v2681_v25  ;;  %v2725_v7 = vld [vmem:[%s4152_s5 + $0x88] sm:$0xff] }
 0x4ca   : > { %v2560_v32 = vpop.permute.xlu0 %2559  ;;  %v2224_v23 = vpop.f32.mrf.mxu3 }
 0x4cb   : > { %2785 = vst [vmem:[%s5101_s14 + $0x68] sm:$0xff] %v2753_v28  ;;  %v2657_v36 = vmul.f32 %v2560_v32, %v5043_v29  ;;  %v2314_v20 = vadd.f32 %v2313_v1, %v2224_v23  ;;  %v2726_v28 = vld [vmem:[%s4152_s5 + $0x90] sm:$0xff] }
 0x4cc   : > { %2777 = vst [vmem:[%s5101_s14 + $0x28] sm:$0xff] %v2745_v50  ;;  %v2565_v42 = vpop.permute.xlu2 %2564  ;;  %v2525_v21 = vpop.permute.xlu1 %2524 }
 0x4cd   : > { %v3749_v40 = vpop.eup %3748  ;;  %v2691_v8 = vmul.f32 %v5092_v13, %v2657_v36  ;;  %v5189_v35 = vadd.f32 %v2314_v20, %v2010_v15  ;;  %v2658_v4 = vmul.f32 %v2565_v42, %v5074_v31  ;;  %v2650_v17 = vmul.f32 %v2525_v21, %v5046_v56  ;;  %v2315_v16 = vpop.f32.mrf.mxu0  ;;  %v2730_v15 = vld [vmem:[%s4152_s5 + $0xb0] sm:$0xff]  ;;  %v2728_v42 = vld [vmem:[%s4152_s5 + $0xa0] sm:$0xff] }
 0x4ce   : > { %2629 = vperm.xlu1 %3494, %v3749_v40   ;;  %v2011_v56 = vmul.f32 0.0, %v5118_v22 }
 0x4cf   : > { %v2755_v29 = vadd.f32 %v2723_v48, %v2691_v8  ;;  %3750 = vrcp.f32 %v5189_v35  ;;  %v2692_v14 = vmul.f32 %v5092_v13, %v2658_v4  ;;  %v2684_v2 = vmul.f32 %v5092_v13, %v2650_v17  ;;  %v2729_v4 = vld [vmem:[%s4152_s5 + $0xa8] sm:$0xff] }
 0x4d1   : > { %2787 = vst [vmem:[%s5101_s14 + $0x78] sm:$0xff] %v2755_v29  ;;  %v2756_v51 = vadd.f32 %v2724_v61, %v2692_v14  ;;  %v2748_v19 = vadd.f32 %v2716_v37, %v2684_v2  ;;  %v2733_v29 = vld [vmem:[%s4152_s5 + $0xc8] sm:$0xff] }
 0x4d2   : > { %v2226_v41 = vpop.f32.mrf.mxu3 }
 0x4d3   : > { %2788 = vst [vmem:[%s5101_s14 + $0x80] sm:$0xff] %v2756_v51  ;;  %v2316_v31 = vadd.f32 %v2315_v16, %v2226_v41 }
 0x4d4   : > { %2780 = vst [vmem:[%s5101_s14 + $0x40] sm:$0xff] %v2748_v19  ;;  %v2540_v3 = vpop.permute.xlu1 %2539  ;;  %v2731_v19 = vld [vmem:[%s4152_s5 + $0xb8] sm:$0xff] }
 0x4d5   : > { %v3751_v45 = vpop.eup %3750  ;;  %v5202_v33 = vadd.f32 %v2316_v31, %v2011_v56  ;;  %v2653_v55 = vmul.f32 %v2540_v3, %v5056_v54  ;;  %v2732_v31 = vld [vmem:[%s4152_s5 + $0xc0] sm:$0xff] }
 0x4d6   : > { %2634 = vperm.xlu0 %3495, %v3751_v45  }
 0x4d7   : > { %3752 = vrcp.f32 %v5202_v33  ;;  %v2687_v39 = vmul.f32 %v5092_v13, %v2653_v55 }
 0x4d8   : > { %v2580_v22 = vpop.permute.xlu2 %2579 }
 0x4d9   : > { %v2751_v58 = vadd.f32 %v2719_v59, %v2687_v39  ;;  %v2661_v12 = vmul.f32 %v2580_v22, %v5087_v9  ;;  %v2736_v59 = vld [vmem:[%s4152_s5 + $0xe0] sm:$0xff] }
 0x4db   : > { %2783 = vst [vmem:[%s5101_s14 + $0x58] sm:$0xff] %v2751_v58  ;;  %v2695_v30 = vmul.f32 %v5092_v13, %v2661_v12  ;;  %v2734_v12 = vld [vmem:[%s4152_s5 + $0xd0] sm:$0xff] }
 0x4dc   : > { %v2555_v47 = vpop.permute.xlu1 %2554 }
 0x4dd   : > { %v3753_v0 = vpop.eup %3752  ;;  %v2759_v54 = vadd.f32 %v2727_v53, %v2695_v30  ;;  %v2656_v38 = vmul.f32 %v2555_v47, %v5068_v27 }
 0x4de   : > { %2639 = vperm.xlu2 %3496, %v3753_v0   ;;  %v2735_v0 = vld [vmem:[%s4152_s5 + $0xd8] sm:$0xff] }
 0x4df   : > { %2791 = vst [vmem:[%s5101_s14 + $0x98] sm:$0xff] %v2759_v54  ;;  %v2690_v24 = vmul.f32 %v5092_v13, %v2656_v38 }
 0x4e1   : > { %v2754_v60 = vadd.f32 %v2722_v44, %v2690_v24  ;;  %v2739_v24 = vld [vmem:[%s4152_s5 + $0xf8] sm:$0xff] }
 0x4e3   : > { %2786 = vst [vmem:[%s5101_s14 + $0x70] sm:$0xff] %v2754_v60 }
 0x4e4   : > { %v2570_v9 = vpop.permute.xlu1 %2569 }
 0x4e5   : > { %v2659_v43 = vmul.f32 %v2570_v9, %v5076_v26 }
 0x4e7   : > { %v2693_v49 = vmul.f32 %v5092_v13, %v2659_v43 }
 0x4e8   : > { %v2575_v25 = vpop.permute.xlu0 %2574 }
 0x4e9   : > { %v2757_v1 = vadd.f32 %v2725_v7, %v2693_v49  ;;  %v2660_v27 = vmul.f32 %v2575_v25, %v5082_v34 }
 0x4eb   : > { %2789 = vst [vmem:[%s5101_s14 + $0x88] sm:$0xff] %v2757_v1  ;;  %v2694_v50 = vmul.f32 %v5092_v13, %v2660_v27  ;;  %v2738_v27 = vld [vmem:[%s4152_s5 + $0xf0] sm:$0xff] }
 0x4ed   : > { %v2758_v32 = vadd.f32 %v2726_v28, %v2694_v50 }
 0x4ef   : > { %2790 = vst [vmem:[%s5101_s14 + $0x90] sm:$0xff] %v2758_v32 }
 0x4f0   : > { %v2595_v23 = vpop.permute.xlu2 %2594 }
 0x4f1   : > { %v2664_v26 = vmul.f32 %v2595_v23, %v5107_v57 }
 0x4f3   : > { %v2698_v36 = vmul.f32 %v5092_v13, %v2664_v26 }
 0x4f5   : > { %v2762_v20 = vadd.f32 %v2730_v15, %v2698_v36 }
 0x4f7   : > { %2794 = vst [vmem:[%s5101_s14 + $0xb0] sm:$0xff] %v2762_v20 }
 0x4f8   : > { %v2585_v48 = vpop.permute.xlu1 %2584 }
 0x4f9   : > { %v2662_v34 = vmul.f32 %v2585_v48, %v5090_v52 }
 0x4fb   : > { %v2696_v21 = vmul.f32 %v5092_v13, %v2662_v34 }
 0x4fd   : > { %v2760_v40 = vadd.f32 %v2728_v42, %v2696_v21 }
 0x4ff   : > { %2792 = vst [vmem:[%s5101_s14 + $0xa0] sm:$0xff] %v2760_v40 }
 0x500   : > { %v2590_v8 = vpop.permute.xlu0 %2589 }
 0x501   : > { %v2663_v57 = vmul.f32 %v2590_v8, %v5104_v5 }
 0x503   : > { %v2697_v17 = vmul.f32 %v5092_v13, %v2663_v57 }
 0x505   : > { %v2761_v61 = vadd.f32 %v2729_v4, %v2697_v17 }
 0x507   : > { %2793 = vst [vmem:[%s5101_s14 + $0xa8] sm:$0xff] %v2761_v61 }
 0x508   : > { %v2610_v37 = vpop.permute.xlu2 %2609 }
 0x509   : > { %v2667_v52 = vmul.f32 %v2610_v37, %v5125_v11 }
 0x50b   : > { %v2701_v14 = vmul.f32 %v5092_v13, %v2667_v52 }
 0x50d   : > { %v2765_v2 = vadd.f32 %v2733_v29, %v2701_v14 }
 0x50f   : > { %2797 = vst [vmem:[%s5101_s14 + $0xc8] sm:$0xff] %v2765_v2 }
 0x510   : > { %v2600_v51 = vpop.permute.xlu1 %2599 }
 0x511   : > { %v2665_v5 = vmul.f32 %v2600_v51, %v5112_v63 }
 0x513   : > { %v2699_v16 = vmul.f32 %v5092_v13, %v2665_v5 }
 0x515   : > { %v2763_v41 = vadd.f32 %v2731_v19, %v2699_v16 }
 0x517   : > { %2795 = vst [vmem:[%s5101_s14 + $0xb8] sm:$0xff] %v2763_v41 }
 0x518   : > { %v2605_v56 = vpop.permute.xlu0 %2604 }
 0x519   : > { %v2666_v11 = vmul.f32 %v2605_v56, %v5120_v6 }
 0x51b   : > { %v2700_v3 = vmul.f32 %v5092_v13, %v2666_v11 }
 0x51d   : > { %v2764_v45 = vadd.f32 %v2732_v31, %v2700_v3 }
 0x51f   : > { %2796 = vst [vmem:[%s5101_s14 + $0xc0] sm:$0xff] %v2764_v45 }
 0x520   : > { %v2625_v55 = vpop.permute.xlu2 %2624 }
 0x521   : > { %v2670_v63 = vmul.f32 %v2625_v55, %v5161_v10 }
 0x523   : > { %v2704_v39 = vmul.f32 %v5092_v13, %v2670_v63 }
 0x525   : > { %v2768_v22 = vadd.f32 %v2736_v59, %v2704_v39 }
 0x527   : > { %2800 = vst [vmem:[%s5101_s14 + $0xe0] sm:$0xff] %v2768_v22 }
 0x528   : > { %v2615_v58 = vpop.permute.xlu1 %2614 }
 0x529   : > { %v2668_v6 = vmul.f32 %v2615_v58, %v5136_v18 }
 0x52b   : > { %v2702_v53 = vmul.f32 %v5092_v13, %v2668_v6 }
 0x52d   : > { %v2766_v30 = vadd.f32 %v2734_v12, %v2702_v53 }
 0x52f   : > { %2798 = vst [vmem:[%s5101_s14 + $0xd0] sm:$0xff] %v2766_v30 }
 0x530   : > { %v2620_v47 = vpop.permute.xlu0 %2619 }
 0x531   : > { %v2669_v10 = vmul.f32 %v2620_v47, %v5149_v46  ;;  %v2737_v46 = vld [vmem:[%s4152_s5 + $0xe8] sm:$0xff] }
 0x533   : > { %v2703_v54 = vmul.f32 %v5092_v13, %v2669_v10 }
 0x535   : > { %v2767_v38 = vadd.f32 %v2735_v0, %v2703_v54 }
 0x537   : > { %2799 = vst [vmem:[%s5101_s14 + $0xd8] sm:$0xff] %v2767_v38 }
 0x538   : > { %v2640_v44 = vpop.permute.xlu2 %2639 }
 0x539   : > { %v2673_v18 = vmul.f32 %v2640_v44, %v5202_v33 }
 0x53b   : > { %v2707_v60 = vmul.f32 %v5092_v13, %v2673_v18 }
 0x53d   : > { %v2771_v9 = vadd.f32 %v2739_v24, %v2707_v60 }
 0x53f   : > { %2803 = vst [vmem:[%s5101_s14 + $0xf8] sm:$0xff] %v2771_v9 }
 0x540   : > { %v2630_v43 = vpop.permute.xlu1 %2629 }
 0x541   : > { %v2671_v7 = vmul.f32 %v2630_v43, %v5173_v62 }
 0x543   : > { %v2705_v49 = vmul.f32 %v5092_v13, %v2671_v7 }
 0x545   : > { %v2769_v25 = vadd.f32 %v2737_v46, %v2705_v49 }
 0x547   : > { %2801 = vst [vmem:[%s5101_s14 + $0xe8] sm:$0xff] %v2769_v25 }
 0x548   : > { %v2635_v33 = vpop.permute.xlu0 %2634 }
 0x549   : > { %v2672_v1 = vmul.f32 %v2635_v33, %v5189_v35 }
 0x54b   : > { %v2706_v62 = vmul.f32 %v5092_v13, %v2672_v1 }
 0x54d   : > { %v2770_v28 = vadd.f32 %v2738_v27, %v2706_v62 }
 0x54f   : > { %2802 = vst [vmem:[%s5101_s14 + $0xf0] sm:$0xff] %v2770_v28 }
 0x550   : > { %3901 = shalt.err (!%p3898_p13)
}
 0x551   : > { %s3974_s1 = smov 128   ;;  %s3975_s25 = smov 8  }
 0x552   : > { %3409 = dma.vmem_to_hbm [thread:$0]  (%p4107_p0), %s2820_s29, 4096, %s2822_s30, %s2805_s26, %s3974_s1, %s3974_s1, %s3975_s25  }
 0x553 PF: > { %s5514_s7 = sld [smem:[#allocation20_spill]]  ;;  %s2836_s8 = sand.u32 1, %s3944_s23  }
 0x554   : > { %p3426_p4 = pnand %p2975_p3, %p4111_p2  ;;  %s2837_s9 = scalar_lea.sflag [#allocation8], %s2836_s8 }
 0x556   : > { %p3427_p5 = pneg %p3426_p4 }
 0x558   : > { %3939 = dma.done.wait (%p3427_p5), %s2837_s9, 4096  }
 0x559   : > { %3941 = vsyncadd (%p3427_p5), %s2837_s9, 4294963200  ;;  %s27_s28 = sadd.s32 1, %s5514_s7   ;;  %s5515_s19 = sld [smem:[#allocation19_spill]] }
 0x55a   : > { %p24_p1 = scmp.ge.s32.totalorder %s27_s28, 4   ;;  %s5516_s25 = sld [smem:[#allocation22_spill]] }
 0x55b   : > { %s5517_s12 = sld [smem:[#allocation21_spill]]  ;;  %s5518_s23 = smov %s3948_s24 }
 0x55c   : > { %s5520_s26 = smov %s3960_s27 }
 0x55d   :  { %26 = sbr.rel (!%p24_p1) target bundleno = 14 (0xe), region = 125 }
 0x55f   : > { %s5519_s24 = smov %s5515_s19 }
 0x561   : > { %s5521_s27 = smov %s5517_s12 }
 0x562   :  { %2843 = vsyncpa [#allocation7], 1 }
 0x563   :  { %2845 = vsyncpa [#allocation7 + $0x1], 1 }
 0x564   :  { %2846 = vsyncpa [#allocation10], 1 }
 0x565   :  { %2848 = vsyncpa [#allocation10 + $0x1], 1 }
 0x566   :  { %2849 = vsyncpa [#allocation13], 1 }
 0x567   :  { %2850 = vsyncpa [#allocation8], 1 }
 0x568   :  { %2852 = vsyncpa [#allocation8 + $0x1], 1 }

</bundles_post_ra>
